<compile_context>
chip_gen: v6e
topology: v6e:2x2x1
jax: 0.10.0
libtpu: 0.0.40
codegen_flags: <defaults>
</compile_context>

<pallas_src>
import jax
import jax.numpy as jnp
import numpy as np
from jax.experimental import pallas as pl
from jax.experimental.pallas import tpu as pltpu


def _round_up(x, m):
    return ((x + m - 1) // m) * m


def _device_profile():
    """Generation-aware VMEM budget / seq-tile cap / megacore flag."""
    kind = ""
    try:
        kind = jax.devices()[0].device_kind.lower()
    except Exception:
        pass
    if ("v7" in kind) or ("7x" in kind):
        # v7x: 64 MiB VMEM per TensorCore, 2 TCs per chip.
        return {"vmem_limit": 56 * 2**20, "seq_tile_cap": 4 * 2**20, "multi_tc": True}
    if ("v5" in kind) or ("v6" in kind):
        # v5e / v6e: 128 MiB VMEM, single TensorCore per chip.
        return {"vmem_limit": 100 * 2**20, "seq_tile_cap": 8 * 2**20, "multi_tc": False}
    # Unknown chip: conservative budget that fits every supported generation.
    return {"vmem_limit": 48 * 2**20, "seq_tile_cap": 4 * 2**20, "multi_tc": False}


def _choose_batch_tile(B, Sp, E, da, r, profile):
    """Batch rows per grid step, budgeting the full per-step VMEM footprint."""
    f32 = 4
    seq_row = Sp * E * f32                       # one batch row of the seq tile
    out_row = 2 * E * f32
    # Rough per-batch-row bytes of live in-kernel intermediates:
    #   bf16 copy of x (2E) + lane-broadcast temp (4E) + a1 f32/bf16 (6*da)
    #   + logits/p/sm (12*r), plus small (E-wide) accumulators.
    inter_row = Sp * (6 * E + 6 * da + 12 * r) + 12 * E
    # Weight/bias input buffers are double-buffered by the pipeline.
    weights = 2 * (E * da + da + da * r + r) * f32
    budget = profile["vmem_limit"] - weights - (2 << 20)   # compiler headroom
    per_row = 2 * seq_row + 2 * out_row + inter_row        # seq/out double-buffered

    rows_vmem = budget // per_row
    rows_tile = profile["seq_tile_cap"] // max(seq_row, 1)
    rows = int(max(1, min(rows_vmem, rows_tile)))
    tb_max = (rows // 8) * 8 if rows >= 8 else rows        # sublane-aligned output block

    B8 = _round_up(B, 8)
    if profile["multi_tc"] and B8 >= 16 and tb_max >= 8:
        # >= 2 balanced grid steps (even count) so the "parallel" batch axis
        # shards evenly across both TensorCores.
        steps = max(2, -(-B8 // tb_max))
        steps += steps % 2
        tb = _round_up(-(-B8 // steps), 8)
        tb = min(tb, tb_max)
    else:
        # Single TC: the grid is a sequential loop -> never force extra steps.
        tb = min(tb_max, B8)
    return max(tb, 1)


def _make_kernel(seq_len):
    """seq_len = real (unpadded) sequence length; Sp inside may be padded."""

    def kernel(seq_ref, w1_ref, b1_ref, w2_ref, b2_ref, out_ref):
        TB, Sp, E = seq_ref.shape
        r = w2_ref.shape[1]

        x = seq_ref[...]                              # (TB, Sp, E) f32
        # Sp is a multiple of 8, so this reshape never crosses an (8,128)
        # tile boundary (no VMEM relayout copy).
        x2d = x.reshape(TB * Sp, E)

        # Attention logits on the MXU: bf16 operands, f32 accumulation.
        a1 = jnp.tanh(
            jnp.dot(x2d.astype(jnp.bfloat16), w1_ref[...].astype(jnp.bfloat16),
                    preferred_element_type=jnp.float32) + b1_ref[...])
        logits = jnp.dot(a1.astype(jnp.bfloat16), w2_ref[...].astype(jnp.bfloat16),
                         preferred_element_type=jnp.float32) + b2_ref[...]
        logits = logits.reshape(TB, Sp, r)

        if Sp != seq_len:
            # Padded sequence rows get -inf logits -> zero softmax weight.
            s_idx = jax.lax.broadcasted_iota(jnp.int32, (TB, Sp, r), 1)
            logits = jnp.where(s_idx < seq_len, logits, -jnp.inf)

        # Softmax over the sequence dim (PyTorch dim=1), exact divide.
        m = jnp.max(logits, axis=1, keepdims=True)
        p = jnp.exp(logits - m)
        sm = p / jnp.sum(p, axis=1, keepdims=True)    # (TB, Sp, r)

        # emb[b, j, :] = sum_s sm[b, s, j] * x[b, s, :]
        # r is small & static: unrolled VPU broadcast-multiply + sum-over-S,
        # accumulating the mean/max over r directly (no batched einsum, no
        # per-batch XLU transposes or tiny MXU pushes, no (TB,r,E) buffer).
        acc = None
        mx = None
        for j in range(r):
            e_j = jnp.sum(sm[:, :, j:j + 1] * x, axis=1)     # (TB, E) f32
            acc = e_j if acc is None else acc + e_j
            mx = e_j if mx is None else jnp.maximum(mx, e_j)

        # Direct slice stores into the sublane-aligned (TB, 2E) output block.
        out_ref[:, :E] = acc * jnp.float32(1.0 / r)
        out_ref[:, E:] = mx

    return kernel


def self_attention_embedding(seq, w1, b1, w2, b2, *, batch_tile=None):
    """seq: (B, S, E) f32. Returns (B, 2*E) f32 (skip_max=False path)."""
    B, S, E = seq.shape
    da = w1.shape[1]
    r = w2.shape[1]

    profile = _device_profile()
    Sp = _round_up(S, 8)                                    # keep the in-kernel reshape free
    tb = batch_tile if batch_tile is not None else _choose_batch_tile(
        B, Sp, E, da, r, profile)
    Bp = _round_up(B, tb)

    if Bp != B or Sp != S:
        # Zero-pad; padded seq rows are masked in-kernel, padded batch rows
        # produce zeros and are sliced off below.
        seq = jnp.pad(seq, ((0, Bp - B), (0, Sp - S), (0, 0)))

    out = pl.pallas_call(
        _make_kernel(S),
        out_shape=jax.ShapeDtypeStruct((Bp, 2 * E), jnp.float32),
        grid_spec=pltpu.PrefetchScalarGridSpec(
            num_scalar_prefetch=0,
            grid=(Bp // tb,),
            in_specs=[
                pl.BlockSpec((tb, Sp, E), lambda b: (b, 0, 0)),   # seq batch tile
                pl.BlockSpec((E, da), lambda b: (0, 0)),          # W1 (E, da)
                pl.BlockSpec((1, da), lambda b: (0, 0)),          # b1
                pl.BlockSpec((da, r), lambda b: (0, 0)),          # W2 (da, r)
                pl.BlockSpec((1, r), lambda b: (0, 0)),           # b2
            ],
            out_specs=pl.BlockSpec((tb, 2 * E), lambda b: (b, 0)),
        ),
        compiler_params=pltpu.CompilerParams(
            dimension_semantics=("parallel",),
            vmem_limit_bytes=int(profile["vmem_limit"]),
        ),
    )(seq, w1, b1, w2, b2)

    return out[:B] if Bp != B else out


def _reference(seq, w1, b1, w2, b2):
    """Pure-JAX reference of the PyTorch forward (mask=None, skip_max=False)."""
    a = jnp.tanh(seq @ w1 + b1)                 # (B, S, da)
    a = a @ w2 + b2                             # (B, S, r)
    a = jax.nn.softmax(a, axis=1)               # softmax over S
    att = jnp.swapaxes(a, 1, 2)                 # (B, r, S)
    emb = att @ seq                             # (B, r, E)
    return jnp.concatenate([emb.mean(axis=1), emb.max(axis=1)], axis=1)


if __name__ == "__main__":
    # Small shapes consistent with the module's forward.
    B, S, d_model = 16, 8, 32
    da, r = 16, 4

    key = jax.random.PRNGKey(0)
    k_seq, k_w1, k_w2 = jax.random.split(key, 3)

    seq = jax.random.normal(k_seq, (B, S, d_model), dtype=jnp.float32)

    # nn.Linear(d_model, da): weight (da, d_model); stored transposed (d_model, da).
    w1 = (jax.random.normal(k_w1, (d_model, da), dtype=jnp.float32)
          * (1.0 / np.sqrt(d_model)))
    b1 = jnp.zeros((1, da), dtype=jnp.float32)          # bias.fill_(0)
    # nn.Linear(da, r): weight (r, da); stored transposed (da, r).
    w2 = (jax.random.normal(k_w2, (da, r), dtype=jnp.float32)
          * (1.0 / np.sqrt(da)))
    b2 = jnp.zeros((1, r), dtype=jnp.float32)           # bias.fill_(0)

    out = jax.block_until_ready(self_attention_embedding(seq, w1, b1, w2, b2))
    ref = _reference(seq, w1, b1, w2, b2)
    # tolerance accounts for bf16 MXU operands (f32 accumulation).
    np.testing.assert_allclose(np.asarray(out), np.asarray(ref),
                               rtol=2e-2, atol=2e-2)

    # Second check: batch/sequence lengths that force padding + masking paths.
    B2, S2 = 4, 6
    seq2 = jax.random.normal(jax.random.PRNGKey(1), (B2, S2, d_model),
                             dtype=jnp.float32)
    out2 = jax.block_until_ready(self_attention_embedding(seq2, w1, b1, w2, b2))
    ref2 = _reference(seq2, w1, b1, w2, b2)
    np.testing.assert_allclose(np.asarray(out2), np.asarray(ref2),
                               rtol=2e-2, atol=2e-2)

    print("KERNEL_OK")
</pallas_src>

<mosaic_0001>
module attributes {stable_mosaic.version = 11 : i64} {
  func.func @kernel(%arg0: i32, %arg1: memref<16x8x32xf32, #tpu.memory_space<vmem>>, %arg2: memref<32x16xf32, #tpu.memory_space<vmem>>, %arg3: memref<1x16xf32, #tpu.memory_space<vmem>>, %arg4: memref<16x4xf32, #tpu.memory_space<vmem>>, %arg5: memref<1x4xf32, #tpu.memory_space<vmem>>, %arg6: memref<16x64xf32, #tpu.memory_space<vmem>>) attributes {dimension_semantics = [#tpu.dimension_semantics<parallel>], iteration_bounds = array<i64: 1>, scalar_prefetch = 0 : i64, scratch_operands = 0 : i64, tpu.core_type = #tpu.core_type<tc>, window_params = [{transform_indices = @transform_0, window_bounds = array<i64: 16, 8, 32>}, {pipeline_mode = #tpu.pipeline_mode<synchronous>, transform_indices = @transform_1, window_bounds = array<i64: 32, 16>}, {pipeline_mode = #tpu.pipeline_mode<synchronous>, transform_indices = @transform_2, window_bounds = array<i64: 1, 16>}, {pipeline_mode = #tpu.pipeline_mode<synchronous>, transform_indices = @transform_3, window_bounds = array<i64: 16, 4>}, {pipeline_mode = #tpu.pipeline_mode<synchronous>, transform_indices = @transform_4, window_bounds = array<i64: 1, 4>}, {transform_indices = @transform_5, window_bounds = array<i64: 16, 64>}]} {
    %c0 = arith.constant 0 : index
    %c0_0 = arith.constant 0 : index
    %c0_1 = arith.constant 0 : index
    %0 = vector.load %arg1[%c0, %c0_0, %c0_1] : memref<16x8x32xf32, #tpu.memory_space<vmem>>, vector<16x8x32xf32>
    %1 = vector.shape_cast %0 : vector<16x8x32xf32> to vector<128x32xf32>
    %2 = arith.truncf %1 : vector<128x32xf32> to vector<128x32xbf16>
    %c0_2 = arith.constant 0 : index
    %c0_3 = arith.constant 0 : index
    %3 = vector.load %arg2[%c0_2, %c0_3] : memref<32x16xf32, #tpu.memory_space<vmem>>, vector<32x16xf32>
    %4 = arith.truncf %3 : vector<32x16xf32> to vector<32x16xbf16>
    %cst = arith.constant dense<0.000000e+00> : vector<128x16xf32>
    %5 = tpu.matmul %2, %4, %cst {dimension_numbers = #tpu.dot_dimension_numbers<[1], [0], [0], [1], [0, 0, 1, 1], [], []>} : vector<128x32xbf16>, vector<32x16xbf16>, vector<128x16xf32> -> vector<128x16xf32>
    %c0_4 = arith.constant 0 : index
    %c0_5 = arith.constant 0 : index
    %6 = vector.load %arg3[%c0_4, %c0_5] : memref<1x16xf32, #tpu.memory_space<vmem>>, vector<1x16xf32>
    %7 = vector.broadcast %6 : vector<1x16xf32> to vector<128x16xf32>
    %8 = arith.addf %5, %7 : vector<128x16xf32>
    %9 = math.tanh %8 : vector<128x16xf32>
    %10 = arith.truncf %9 : vector<128x16xf32> to vector<128x16xbf16>
    %c0_6 = arith.constant 0 : index
    %c0_7 = arith.constant 0 : index
    %11 = vector.load %arg4[%c0_6, %c0_7] : memref<16x4xf32, #tpu.memory_space<vmem>>, vector<16x4xf32>
    %12 = arith.truncf %11 : vector<16x4xf32> to vector<16x4xbf16>
    %cst_8 = arith.constant dense<0.000000e+00> : vector<128x4xf32>
    %13 = tpu.matmul %10, %12, %cst_8 {dimension_numbers = #tpu.dot_dimension_numbers<[1], [0], [0], [1], [0, 0, 1, 1], [], []>} : vector<128x16xbf16>, vector<16x4xbf16>, vector<128x4xf32> -> vector<128x4xf32>
    %c0_9 = arith.constant 0 : index
    %c0_10 = arith.constant 0 : index
    %14 = vector.load %arg5[%c0_9, %c0_10] : memref<1x4xf32, #tpu.memory_space<vmem>>, vector<1x4xf32>
    %15 = vector.broadcast %14 : vector<1x4xf32> to vector<128x4xf32>
    %16 = arith.addf %13, %15 : vector<128x4xf32>
    %17 = vector.shape_cast %16 : vector<128x4xf32> to vector<16x8x4xf32>
    %cst_11 = arith.constant dense<0xFF800000> : vector<16x4xf32>
    %18 = vector.multi_reduction <maximumf>, %17, %cst_11 [1] : vector<16x8x4xf32> to vector<16x4xf32>
    %19 = vector.shape_cast %18 : vector<16x4xf32> to vector<16x1x4xf32>
    %20 = vector.broadcast %19 : vector<16x1x4xf32> to vector<16x8x4xf32>
    %21 = arith.subf %17, %20 : vector<16x8x4xf32>
    %22 = math.exp %21 : vector<16x8x4xf32>
    %cst_12 = arith.constant dense<0.000000e+00> : vector<16x4xf32>
    %23 = vector.multi_reduction <add>, %22, %cst_12 [1] : vector<16x8x4xf32> to vector<16x4xf32>
    %24 = vector.shape_cast %23 : vector<16x4xf32> to vector<16x1x4xf32>
    %25 = vector.broadcast %24 : vector<16x1x4xf32> to vector<16x8x4xf32>
    %26 = arith.divf %22, %25 : vector<16x8x4xf32>
    %27 = vector.extract_strided_slice %26 {offsets = [0, 0, 0], sizes = [16, 8, 1], strides = [1, 1, 1]} : vector<16x8x4xf32> to vector<16x8x1xf32>
    %28 = vector.broadcast %27 : vector<16x8x1xf32> to vector<16x8x32xf32>
    %29 = arith.mulf %28, %0 : vector<16x8x32xf32>
    %cst_13 = arith.constant dense<0.000000e+00> : vector<16x32xf32>
    %30 = vector.multi_reduction <add>, %29, %cst_13 [1] : vector<16x8x32xf32> to vector<16x32xf32>
    %31 = vector.extract_strided_slice %26 {offsets = [0, 0, 1], sizes = [16, 8, 1], strides = [1, 1, 1]} : vector<16x8x4xf32> to vector<16x8x1xf32>
    %32 = vector.broadcast %31 : vector<16x8x1xf32> to vector<16x8x32xf32>
    %33 = arith.mulf %32, %0 : vector<16x8x32xf32>
    %cst_14 = arith.constant dense<0.000000e+00> : vector<16x32xf32>
    %34 = vector.multi_reduction <add>, %33, %cst_14 [1] : vector<16x8x32xf32> to vector<16x32xf32>
    %35 = arith.addf %30, %34 : vector<16x32xf32>
    %36 = arith.maximumf %30, %34 : vector<16x32xf32>
    %37 = vector.extract_strided_slice %26 {offsets = [0, 0, 2], sizes = [16, 8, 1], strides = [1, 1, 1]} : vector<16x8x4xf32> to vector<16x8x1xf32>
    %38 = vector.broadcast %37 : vector<16x8x1xf32> to vector<16x8x32xf32>
    %39 = arith.mulf %38, %0 : vector<16x8x32xf32>
    %cst_15 = arith.constant dense<0.000000e+00> : vector<16x32xf32>
    %40 = vector.multi_reduction <add>, %39, %cst_15 [1] : vector<16x8x32xf32> to vector<16x32xf32>
    %41 = arith.addf %35, %40 : vector<16x32xf32>
    %42 = arith.maximumf %36, %40 : vector<16x32xf32>
    %43 = vector.extract_strided_slice %26 {offsets = [0, 0, 3], sizes = [16, 8, 1], strides = [1, 1, 1]} : vector<16x8x4xf32> to vector<16x8x1xf32>
    %44 = vector.broadcast %43 : vector<16x8x1xf32> to vector<16x8x32xf32>
    %45 = arith.mulf %44, %0 : vector<16x8x32xf32>
    %cst_16 = arith.constant dense<0.000000e+00> : vector<16x32xf32>
    %46 = vector.multi_reduction <add>, %45, %cst_16 [1] : vector<16x8x32xf32> to vector<16x32xf32>
    %47 = arith.addf %41, %46 : vector<16x32xf32>
    %48 = arith.maximumf %42, %46 : vector<16x32xf32>
    %cst_17 = arith.constant 2.500000e-01 : f32
    %49 = vector.broadcast %cst_17 : f32 to vector<16x32xf32>
    %50 = arith.mulf %47, %49 : vector<16x32xf32>
    %c0_18 = arith.constant 0 : index
    %c0_19 = arith.constant 0 : index
    %51 = vector.load %arg6[%c0_18, %c0_19] : memref<16x64xf32, #tpu.memory_space<vmem>>, vector<16x32xf32>
    tpu.vector_store %arg6[%c0_18, %c0_19], %50 {strides = array<i32>} : memref<16x64xf32, #tpu.memory_space<vmem>>, vector<16x32xf32>,
    %c0_20 = arith.constant 0 : index
    %c32 = arith.constant 32 : index
    %52 = vector.load %arg6[%c0_20, %c32] : memref<16x64xf32, #tpu.memory_space<vmem>>, vector<16x32xf32>
    tpu.vector_store %arg6[%c0_20, %c32], %48 {strides = array<i32>} : memref<16x64xf32, #tpu.memory_space<vmem>>, vector<16x32xf32>,
    return
  }
  func.func @transform_0(%arg0: i32) -> (i32, i32, i32) {
    %c0_i32 = arith.constant 0 : i32
    %c0_i32_0 = arith.constant 0 : i32
    %c0_i32_1 = arith.constant 0 : i32
    return %arg0, %c0_i32, %c0_i32_0 : i32, i32, i32
  }
  func.func @transform_1(%arg0: i32) -> (i32, i32) {
    %c0_i32 = arith.constant 0 : i32
    %c0_i32_0 = arith.constant 0 : i32
    %c0_i32_1 = arith.constant 0 : i32
    return %c0_i32, %c0_i32_0 : i32, i32
  }
  func.func @transform_2(%arg0: i32) -> (i32, i32) {
    %c0_i32 = arith.constant 0 : i32
    %c0_i32_0 = arith.constant 0 : i32
    %c0_i32_1 = arith.constant 0 : i32
    return %c0_i32, %c0_i32_0 : i32, i32
  }
  func.func @transform_3(%arg0: i32) -> (i32, i32) {
    %c0_i32 = arith.constant 0 : i32
    %c0_i32_0 = arith.constant 0 : i32
    %c0_i32_1 = arith.constant 0 : i32
    return %c0_i32, %c0_i32_0 : i32, i32
  }
  func.func @transform_4(%arg0: i32) -> (i32, i32) {
    %c0_i32 = arith.constant 0 : i32
    %c0_i32_0 = arith.constant 0 : i32
    %c0_i32_1 = arith.constant 0 : i32
    return %c0_i32, %c0_i32_0 : i32, i32
  }
  func.func @transform_5(%arg0: i32) -> (i32, i32) {
    %c0_i32 = arith.constant 0 : i32
    %c0_i32_0 = arith.constant 0 : i32
    return %arg0, %c0_i32 : i32, i32
  }
}

</mosaic_0001>

<bundles_post_ra>
// kernel: tpu_custom_call.1
= control target key start
LH: loop header
LB: loop body
LE: loop exit
PB: predicated region body
PF: predicated region fallthrough
CT: control target
= control target key end

     0   :  { %10 = vsyncpa [#allocation3], 0  ;;  %s2727_s0 = inlined_call_operand.hbm [shape: f32[16,8,32], index: 0, kind: input, shape index: {}]   ;;  %s2728_s1 = inlined_call_operand.vmem [shape: f32[32,16], index: 1, kind: input, shape index: {}]   ;;  %s2729_s2 = inlined_call_operand.vmem [shape: f32[1,16], index: 2, kind: input, shape index: {}]   ;;  %s2730_s3 = inlined_call_operand.vmem [shape: f32[16,4], index: 3, kind: input, shape index: {}]   ;;  %s2731_s4 = inlined_call_operand.vmem [shape: f32[1,4], index: 4, kind: input, shape index: {}]   ;;  %s2732_s5 = inlined_call_operand.hbm [shape: f32[16,64], index: 5, kind: output, shape index: {}]  }
   0x1   :  { %11 = vsyncpa [#allocation4], 0  ;;  %s1948_s18 = smov [#allocation2]  }
   0x2   :  { %s17_s19 = sshll.u32 %s1948_s18, 4  ;;  %s18_s19 = int_to_ptr.vmem [resolvable:$true] %s17_s19 }
   0x3   :  { %s1912_s20 = scalar_lea.vmem %s18_s19, 2048  ;;  %p1917_p1 = scmp.lt.s32.totalorder %s18_s19, %s18_s19 }
   0x4   :  { %p1913_p0 = scmp.ne.s32.totalorder %s18_s19, %s1912_s20  ;;  %p1918_p2 = scmp.lt.s32.totalorder %s1912_s20, %s1912_s20 }
   0x6   :  { %p1919_p3 = por %p1918_p2, %p1917_p1 }
   0x8   :  { %p1920_p4 = pnand %p1919_p3, %p1913_p0 }
   0xa   :  { %1923 = shalt.err (!%p1920_p4)
}
   0xb   :  { %s1949_s21 = smov 128   ;;  %s1950_s22 = smov 8  }
   0xc   :  { %23 = dma.hbm_to_vmem [thread:$0]  %s2727_s0, 2048, %s18_s19, [#allocation3], %s1949_s21, %s1949_s21, %s1950_s22  }
   0xd   :  { %1944 = dma.done.wait [#allocation3], 2048  }
   0xe   :  { %1945 = vsyncadd [#allocation3], 4294965248  ;;  %v62_v0 = vld [vmem:[%s2728_s1 + $0x10] sm:$0xff]  ;;  %v63_v1 = vld [vmem:[%s2728_s1 + $0x18] sm:$0xff]  ;;  %vm73_vm0 = vcmask 261120   ;;  %vm229_vm1 = vcmask 130048  }
   0xf   :  { %v60_v2 = vld [vmem:[%s2728_s1] sm:$0xff]  ;;  %v65_v3 = vpack.c.bf16 %v63_v1, %v62_v0  ;;  %v61_v4 = vld [vmem:[%s2728_s1 + $0x8] sm:$0xff]  ;;  %v38_v9 = vld [vmem:[#allocation2 + $0x10] sm:$0xff]  ;;  %vm351_vm2 = vcmask 31744   ;;  %vm1568_vm3 = vcmask 1041409   ;;  %vm1570_vm4 = vcmask 1042434  }
  0x10   :  { %v36_v5 = vld [vmem:[#allocation2] sm:$0xff]  ;;  %v37_v6 = vld [vmem:[#allocation2 + $0x8] sm:$0xff]  ;;  %v64_v7 = vpack.c.bf16 %v61_v4, %v60_v2  ;;  %v39_v10 = vld [vmem:[#allocation2 + $0x18] sm:$0xff]  ;;  %vm1572_vm5 = vcmask 1043459   ;;  %vm1574_vm6 = vcmask 1044484   ;;  %vm1576_vm7 = vcmask 1045509  }
  0x11   :  { %v52_v8 = vpack.c.bf16 %v37_v6, %v36_v5  ;;  %1686 = vmatprep.subr.bf16.mxu0 %v65_v3  ;;  %v40_v11 = vld [vmem:[#allocation2 + $0x20] sm:$0xff]  ;;  %v41_v12 = vld [vmem:[#allocation2 + $0x28] sm:$0xff]  ;;  %v53_v13 = vpack.c.bf16 %v39_v10, %v38_v9  ;;  %v42_v15 = vld [vmem:[#allocation2 + $0x30] sm:$0xff]  ;;  %vm1578_vm8 = vcmask 1046534   ;;  %vm1580_vm9 = vcmask 1047559   ;;  %s1956_s12 = smov [#allocation5]  }
  0x12   :  { %1687 = vmatpush3.bf16.msra.mxu0 %v65_v3  ;;  %v54_v14 = vpack.c.bf16 %v41_v12, %v40_v11  ;;  %v43_v16 = vld [vmem:[#allocation2 + $0x38] sm:$0xff]  ;;  %v44_v17 = vld [vmem:[#allocation2 + $0x40] sm:$0xff]  ;;  %v45_v18 = vld [vmem:[#allocation2 + $0x48] sm:$0xff]  ;;  %vm1629_vm10 = vcmask 523520   ;;  %s1637_s13 = sshll.u32 %s1956_s12, 4  ;;  %s1638_s13 = int_to_ptr.vmem [resolvable:$true] %s1637_s13 }
  0x13   :  { %1690 = vmatprep.mubr.msk.bf16.mxu0 %vm73_vm0, %v52_v8  ;;  %1688 = vmatprep.subr.bf16.mxu0 %v64_v7  ;;  %v55_v19 = vpack.c.bf16 %v43_v16, %v42_v15  ;;  %v56_v20 = vpack.c.bf16 %v45_v18, %v44_v17  ;;  %v46_v21 = vld [vmem:[#allocation2 + $0x50] sm:$0xff]  ;;  %v47_v22 = vld [vmem:[#allocation2 + $0x58] sm:$0xff]  ;;  %v48_v23 = vld [vmem:[#allocation2 + $0x60] sm:$0xff]  ;;  %s1924_s14 = scalar_lea.vmem %s1638_s13, 256  ;;  %p1929_p6 = scmp.lt.s32.totalorder %s1638_s13, %s1638_s13 }
  0x14   :  { %v49_v24 = vld [vmem:[#allocation2 + $0x68] sm:$0xff]  ;;  %v57_v25 = vpack.c.bf16 %v47_v22, %v46_v21  ;;  %v50_v27 = vld [vmem:[#allocation2 + $0x70] sm:$0xff]  ;;  %v51_v28 = vld [vmem:[#allocation2 + $0x78] sm:$0xff]  ;;  %p1925_p5 = scmp.ne.s32.totalorder %s1638_s13, %s1924_s14  ;;  %p1930_p7 = scmp.lt.s32.totalorder %s1924_s14, %s1924_s14 }
  0x15   :  { %v58_v26 = vpack.c.bf16 %v49_v24, %v48_v23  ;;  %v59_v29 = vpack.c.bf16 %v51_v28, %v50_v27  ;;  %v219_v30 = vld [vmem:[%s2730_s3] sm:$0xff]  ;;  %v220_v31 = vld [vmem:[%s2730_s3 + $0x8] sm:$0xff] }
  0x16   :  { %1689 = vmatpush3.bf16.msra.mxu0 %v64_v7  ;;  %v221_v32 = vpack.c.bf16 %v220_v31, %v219_v30  ;;  %v1649_v34 = vld [vmem:[%s2729_s2] ss:$0 sm:$0xff]  ;;  %p1931_p8 = por %p1930_p7, %p1929_p6 }
  0x17   :  { %v2035_v27 = vld [vmem:[%s2731_s4] ss:$0 sm:$0xff]  ;;  %s1955_s4 = smov 32  }
  0x18   :  { %1706 = vmatprep.subr.bf16.mxu1 %v221_v32  ;;  %p1932_p9 = pnand %p1931_p8, %p1925_p5 }
  0x19   :  { %1691 = vmatmul.mubr.msk.bf16.vlgmr.msra.gmra.mxu0 %vm73_vm0, %v53_v13  ;;  %1707 = vmatpush3.bf16.msra.mxu1 %v221_v32 }
  0x1a   :  { %1694 = vmatprep.mubr.msk.bf16.mxu0 %vm73_vm0, %v54_v14 }
  0x21   :  { %1695 = vmatmul.mubr.msk.bf16.gmra.mxu0 %vm73_vm0, %v55_v19 }
  0x22   :  { %1698 = vmatprep.mubr.msk.bf16.mxu0 %vm73_vm0, %v56_v20 }
  0x29   :  { %1699 = vmatmul.mubr.msk.bf16.gmra.mxu0 %vm73_vm0, %v57_v25 }
  0x2a   :  { %1702 = vmatprep.mubr.msk.bf16.mxu0 %vm73_vm0, %v58_v26  ;;  %v1951_v26 = vmov 0  }
  0x2b   :  { %1733 = vset.pattern.permute.xlu1 %v1951_v26  ;;  %1737 = vset.pattern.permute.xlu0 %v1951_v26 }
  0x31   :  { %1703 = vmatmul.mubr.msk.bf16.gmra.mxu0 %vm73_vm0, %v59_v29 }
  0xd9   :  { %v1692_v33 = vpop.f32.mrf.mxu0 }
  0xda   :  { %v141_v39 = vadd.f32 %v1692_v33, %v1649_v34 }
  0xdb   :  { %v132_v35 = vpop.f32.mrf.mxu0 }
  0xdc   :  { %v133_v36 = vadd.f32 %v1649_v34, %v132_v35 }
  0xdd   :  { %v1693_v37 = vpop.f32.mrf.mxu0 }
  0xde   :  { %v144_v38 = vadd.f32 %v1693_v37, %v1649_v34  ;;  %1792 = vtanh.f32 %v133_v36 }
  0xdf   :  { %v135_v40 = vpop.f32.mrf.mxu0 }
  0xe0   :  { %v136_v41 = vadd.f32 %v1649_v34, %v135_v40  ;;  %1794 = vtanh.f32 %v144_v38 }
  0xe1   :  { %v1696_v42 = vpop.f32.mrf.mxu0 }
  0xe2   :  { %1796 = vtanh.f32 %v136_v41  ;;  %v157_v43 = vadd.f32 %v1696_v42, %v1649_v34 }
  0xe3   :  { %1798 = vtanh.f32 %v141_v39  ;;  %v148_v44 = vpop.f32.mrf.mxu0 }
  0xe4   :  { %v149_v45 = vadd.f32 %v1649_v34, %v148_v44  ;;  %1800 = vtanh.f32 %v157_v43 }
  0xe5   :  { %v1697_v46 = vpop.f32.mrf.mxu0 }
  0xe6   :  { %v160_v47 = vadd.f32 %v1697_v46, %v1649_v34  ;;  %1802 = vtanh.f32 %v149_v45 }
  0xe7   :  { %v151_v48 = vpop.f32.mrf.mxu0 }
  0xe8   :  { %1804 = vtanh.f32 %v160_v47  ;;  %v152_v49 = vadd.f32 %v1649_v34, %v151_v48 }
  0xe9   :  { %v1700_v50 = vpop.f32.mrf.mxu0 }
  0xea   :  { %1806 = vtanh.f32 %v152_v49  ;;  %v173_v51 = vadd.f32 %v1700_v50, %v1649_v34 }
  0xeb   :  { %v164_v52 = vpop.f32.mrf.mxu0  ;;  %v1793_v54 = vpop.eup %1792 }
  0xec   :  { %v165_v53 = vadd.f32 %v1649_v34, %v164_v52  ;;  %1808 = vtanh.f32 %v173_v51 }
  0xed   :  { %v1701_v55 = vpop.f32.mrf.mxu0  ;;  %v1795_v56 = vpop.eup %1794 }
  0xee   :  { %v176_v57 = vadd.f32 %v1701_v55, %v1649_v34  ;;  %1810 = vtanh.f32 %v165_v53 }
  0xef   :  { %v1797_v58 = vpop.eup %1796  ;;  %v167_v59 = vpop.f32.mrf.mxu0 }
  0xf0   :  { %v1799_v60 = vpop.eup %1798  ;;  %v211_v61 = vpack.c.bf16 %v1797_v58, %v1793_v54  ;;  %1812 = vtanh.f32 %v176_v57  ;;  %v168_v62 = vadd.f32 %v1649_v34, %v167_v59 }
  0xf1   :  { %v212_v63 = vpack.c.bf16 %v1795_v56, %v1799_v60  ;;  %v1704_v0 = vpop.f32.mrf.mxu0  ;;  %v1801_v2 = vpop.eup %1800 }
  0xf2   :  { %1708 = vmatprep.mubr.msk.bf16.mxu1 %vm229_vm1, %v211_v61  ;;  %1814 = vtanh.f32 %v168_v62  ;;  %v189_v1 = vadd.f32 %v1704_v0, %v1649_v34 }
  0xf3   :  { %1709 = vmatmul.mubr.msk.bf16.vlgmr.msra.gmra.mxu1 %vm229_vm1, %v212_v63  ;;  %v180_v3 = vpop.f32.mrf.mxu0  ;;  %v1803_v4 = vpop.eup %1802 }
  0xf4   :  { %v181_v5 = vadd.f32 %v1649_v34, %v180_v3  ;;  %1816 = vtanh.f32 %v189_v1 }
  0xf5   :  { %v1805_v6 = vpop.eup %1804  ;;  %v1705_v7 = vpop.f32.mrf.mxu0 }
  0xf6   :  { %v192_v8 = vadd.f32 %v1705_v7, %v1649_v34  ;;  %v214_v10 = vpack.c.bf16 %v1805_v6, %v1801_v2  ;;  %1818 = vtanh.f32 %v181_v5 }
  0xf7   :  { %v1807_v9 = vpop.eup %1806  ;;  %v183_v11 = vpop.f32.mrf.mxu0 }
  0xf8   :  { %v213_v12 = vpack.c.bf16 %v1807_v9, %v1803_v4  ;;  %1820 = vtanh.f32 %v192_v8  ;;  %v184_v13 = vadd.f32 %v1649_v34, %v183_v11 }
  0xf9   :  { %v1809_v14 = vpop.eup %1808 }
  0xfa   :  { %1712 = vmatprep.mubr.msk.bf16.mxu1 %vm229_vm1, %v213_v12  ;;  %1822 = vtanh.f32 %v184_v13 }
  0xfb   :  { %1713 = vmatmul.mubr.msk.bf16.gmra.mxu1 %vm229_vm1, %v214_v10  ;;  %v1811_v15 = vpop.eup %1810 }
  0xfd   :  { %v1813_v16 = vpop.eup %1812 }
  0xfe   :  { %v216_v18 = vpack.c.bf16 %v1813_v16, %v1809_v14 }
  0xff   :  { %v1815_v17 = vpop.eup %1814 }
 0x100   :  { %v215_v19 = vpack.c.bf16 %v1815_v17, %v1811_v15 }
 0x101   :  { %v1817_v20 = vpop.eup %1816 }
 0x102   :  { %1716 = vmatprep.mubr.msk.bf16.mxu1 %vm229_vm1, %v215_v19 }
 0x103   :  { %1717 = vmatmul.mubr.msk.bf16.gmra.mxu1 %vm229_vm1, %v216_v18  ;;  %v1819_v21 = vpop.eup %1818 }
 0x105   :  { %v1821_v22 = vpop.eup %1820 }
 0x106   :  { %v218_v24 = vpack.c.bf16 %v1821_v22, %v1817_v20 }
 0x107   :  { %v1823_v23 = vpop.eup %1822 }
 0x108   :  { %v217_v25 = vpack.c.bf16 %v1823_v23, %v1819_v21 }
 0x10a   :  { %1720 = vmatprep.mubr.msk.bf16.mxu1 %vm229_vm1, %v217_v25 }
 0x10b   :  { %1721 = vmatmul.mubr.msk.bf16.gmra.mxu1 %vm229_vm1, %v218_v24 }
 0x1b3   :  { %v1710_v28 = vpop.f32.mrf.mxu1 }
 0x1b4   :  { %v297_v29 = vadd.f32 %v1710_v28, %v2035_v27 }
 0x1b5   :  { %v288_v30 = vpop.f32.mrf.mxu1 }
 0x1b6   :  { %v366_v31 = vsel %vm351_vm2, %v297_v29, -inf  ;;  %v289_v32 = vadd.f32 %v2035_v27, %v288_v30 }
 0x1b7   :  { %v367_v33 = vrot.slane %v366_v31, 4  ;;  %v1711_v34 = vpop.f32.mrf.mxu1 }
 0x1b8   :  { %v352_v35 = vsel %vm351_vm2, %v289_v32, -inf  ;;  %v300_v36 = vadd.f32 %v1711_v34, %v2035_v27 }
 0x1b9   :  { %v368_v37 = vmax.f32 %v366_v31, %v367_v33  ;;  %v353_v38 = vrot.slane %v352_v35, 4  ;;  %v291_v39 = vpop.f32.mrf.mxu1 }
 0x1ba   :  { %v373_v40 = vsel %vm351_vm2, %v300_v36, -inf  ;;  %v292_v41 = vadd.f32 %v2035_v27, %v291_v39 }
 0x1bb   :  { %v369_v42 = vrot.slane %v368_v37, 2  ;;  %v354_v43 = vmax.f32 %v352_v35, %v353_v38  ;;  %v374_v44 = vrot.slane %v373_v40, 4  ;;  %v1714_v45 = vpop.f32.mrf.mxu1 }
 0x1bc   :  { %v359_v46 = vsel %vm351_vm2, %v292_v41, -inf  ;;  %v313_v47 = vadd.f32 %v1714_v45, %v2035_v27 }
 0x1bd   :  { %v370_v48 = vmax.f32 %v368_v37, %v369_v42  ;;  %v355_v49 = vrot.slane %v354_v43, 2  ;;  %v375_v50 = vmax.f32 %v373_v40, %v374_v44  ;;  %v360_v51 = vrot.slane %v359_v46, 4  ;;  %v304_v52 = vpop.f32.mrf.mxu1 }
 0x1be   :  { %v394_v53 = vsel %vm351_vm2, %v313_v47, -inf  ;;  %v2048_v54 = vadd.f32 %v2035_v27, %v304_v52 }
 0x1bf   :  { %v371_v55 = vrot.slane %v370_v48, 1  ;;  %v356_v56 = vmax.f32 %v354_v43, %v355_v49  ;;  %v376_v57 = vrot.slane %v375_v50, 2  ;;  %v361_v58 = vmax.f32 %v359_v46, %v360_v51  ;;  %v1715_v13 = vpop.f32.mrf.mxu1 }
 0x1c0   :  { %v395_v59 = vrot.slane %v394_v53, 4  ;;  %v380_v60 = vsel %vm351_vm2, %v2048_v54, -inf  ;;  %v2053_v19 = vadd.f32 %v1715_v13, %v2035_v27 }
 0x1c1   :  { %v372_v61 = vmax.f32 %v370_v48, %v371_v55  ;;  %v357_v62 = vrot.slane %v356_v56, 1  ;;  %v377_v63 = vmax.f32 %v375_v50, %v376_v57  ;;  %v362_v0 = vrot.slane %v361_v58, 2  ;;  %v307_v23 = vpop.f32.mrf.mxu1 }
 0x1c2   :  { %v396_v1 = vmax.f32 %v394_v53, %v395_v59  ;;  %v381_v2 = vrot.slane %v380_v60, 4  ;;  %v2058_v30 = vadd.f32 %v2035_v27, %v307_v23 }
 0x1c3   :  { %v466_v3 = vsub.f32 %v297_v29, %v372_v61  ;;  %v358_v4 = vmax.f32 %v356_v56, %v357_v62  ;;  %v378_v5 = vrot.slane %v377_v63, 1  ;;  %v363_v6 = vmax.f32 %v361_v58, %v362_v0 }
 0x1c4   :  { %v397_v7 = vrot.slane %v396_v1, 2  ;;  %v382_v8 = vmax.f32 %v380_v60, %v381_v2  ;;  %v401_v29 = vsel %vm351_vm2, %v2053_v19, -inf  ;;  %v387_v34 = vsel %vm351_vm2, %v2058_v30, -inf }
 0x1c5   :  { %v484_v9 = vmul.f32 1.442695, %v466_v3  ;;  %v464_v10 = vsub.f32 %v289_v32, %v358_v4  ;;  %v379_v11 = vmax.f32 %v377_v63, %v378_v5  ;;  %v364_v12 = vrot.slane %v363_v6, 1 }
 0x1c6   :  { %v398_v14 = vmax.f32 %v396_v1, %v397_v7  ;;  %v383_v22 = vrot.slane %v382_v8, 2  ;;  %v402_v33 = vrot.slane %v401_v29, 4  ;;  %v388_v39 = vrot.slane %v387_v34, 4 }
 0x1c7   :  { %1824 = vpow2.f32 %v484_v9  ;;  %v480_v15 = vmul.f32 1.442695, %v464_v10  ;;  %v467_v16 = vsub.f32 %v300_v36, %v379_v11  ;;  %v365_v17 = vmax.f32 %v363_v6, %v364_v12  ;;  %v1718_v36 = vpop.f32.mrf.mxu1 }
 0x1c8   :  { %v399_v18 = vrot.slane %v398_v14, 1  ;;  %v384_v31 = vmax.f32 %v382_v8, %v383_v22  ;;  %v2063_v37 = vadd.f32 %v1718_v36, %v2035_v27  ;;  %v403_v38 = vmax.f32 %v401_v29, %v402_v33 }
 0x1c9   :  { %1826 = vpow2.f32 %v480_v15  ;;  %v486_v20 = vmul.f32 1.442695, %v467_v16  ;;  %v465_v21 = vsub.f32 %v292_v41, %v365_v17  ;;  %v389_v48 = vmax.f32 %v387_v34, %v388_v39  ;;  %v320_v60 = vpop.f32.mrf.mxu1 }
 0x1ca   :  { %v400_v24 = vmax.f32 %v398_v14, %v399_v18  ;;  %v385_v35 = vrot.slane %v384_v31, 1  ;;  %v422_v45 = vsel %vm351_vm2, %v2063_v37, -inf  ;;  %v2085_v0 = vadd.f32 %v2035_v27, %v320_v60 }
 0x1cb   :  { %1828 = vpow2.f32 %v486_v20  ;;  %v482_v25 = vmul.f32 1.442695, %v465_v21  ;;  %v423_v55 = vrot.slane %v422_v45, 4  ;;  %v390_v63 = vrot.slane %v389_v48, 2  ;;  %v1719_v29 = vpop.f32.mrf.mxu1 }
 0x1cc   :  { %v470_v28 = vsub.f32 %v313_v47, %v400_v24  ;;  %v386_v42 = vmax.f32 %v384_v31, %v385_v35  ;;  %v404_v47 = vrot.slane %v403_v38, 2  ;;  %v408_v11 = vsel %vm351_vm2, %v2085_v0, -inf }
 0x1cd   :  { %1830 = vpow2.f32 %v482_v25  ;;  %v424_v5 = vmax.f32 %v422_v45, %v423_v55  ;;  %v391_v14 = vmax.f32 %v389_v48, %v390_v63  ;;  %v409_v20 = vrot.slane %v408_v11, 4  ;;  %v323_v48 = vpop.f32.mrf.mxu1 }
 0x1ce   :  { %v492_v32 = vmul.f32 1.442695, %v470_v28  ;;  %v468_v53 = vsub.f32 %v2048_v54, %v386_v42  ;;  %v405_v62 = vmax.f32 %v403_v38, %v404_v47  ;;  %v2094_v33 = vadd.f32 %v1719_v29, %v2035_v27 }
 0x1cf   :  { %v425_v15 = vrot.slane %v424_v5, 2  ;;  %v392_v24 = vrot.slane %v391_v14, 1 }
 0x1d0   :  { %1832 = vpow2.f32 %v492_v32  ;;  %v488_v54 = vmul.f32 1.442695, %v468_v53  ;;  %v406_v13 = vrot.slane %v405_v62, 1  ;;  %v410_v32 = vmax.f32 %v408_v11, %v409_v20 }
 0x1d1   :  { %v426_v28 = vmax.f32 %v424_v5, %v425_v15  ;;  %v393_v36 = vmax.f32 %v391_v14, %v392_v24  ;;  %v429_v42 = vsel %vm351_vm2, %v2094_v33, -inf  ;;  %v1952_v15 = vmov 1  }
 0x1d2   :  { %1834 = vpow2.f32 %v488_v54  ;;  %v407_v23 = vmax.f32 %v405_v62, %v406_v13 }
 0x1d3   :  { %v427_v39 = vrot.slane %v426_v28, 1  ;;  %v469_v47 = vsub.f32 %v2058_v30, %v393_v36 }
 0x1d4   :  { %v2065_v40 = vpop.eup %1824  ;;  %v471_v35 = vsub.f32 %v2053_v19, %v407_v23  ;;  %v2103_v19 = vadd.f32 %v2035_v27, %v323_v48 }
 0x1d5   :  { %v526_v41 = vsel %vm351_vm2, %v2065_v40, 0.0 }
 0x1d6   :  { %v2069_v43 = vpop.eup %1826  ;;  %v527_v44 = vrot.slane %v526_v41, 4 }
 0x1d7   :  { %v512_v46 = vsel %vm351_vm2, %v2069_v43, 0.0 }
 0x1d8   :  { %v2075_v49 = vpop.eup %1828  ;;  %v528_v50 = vadd.f32 %v527_v44, %v526_v41  ;;  %v513_v51 = vrot.slane %v512_v46, 4  ;;  %v411_v41 = vrot.slane %v410_v32, 2 }
 0x1d9   :  { %v533_v52 = vsel %vm351_vm2, %v2075_v49, 0.0 }
 0x1da   :  { %v2080_v56 = vpop.eup %1830  ;;  %v529_v57 = vrot.slane %v528_v50, 2  ;;  %v514_v58 = vadd.f32 %v513_v51, %v512_v46  ;;  %v534_v59 = vrot.slane %v533_v52, 4  ;;  %v494_v46 = vmul.f32 1.442695, %v471_v35 }
 0x1db   :  { %v519_v61 = vsel %vm351_vm2, %v2080_v56, 0.0  ;;  %v428_v51 = vmax.f32 %v426_v28, %v427_v39  ;;  %v412_v55 = vmax.f32 %v410_v32, %v411_v41 }
 0x1dc   :  { %v530_v1 = vadd.f32 %v529_v57, %v528_v50  ;;  %v515_v2 = vrot.slane %v514_v58, 2  ;;  %v535_v3 = vadd.f32 %v534_v59, %v533_v52  ;;  %v520_v4 = vrot.slane %v519_v61, 4 }
 0x1dd   :  { %v2087_v9 = vpop.eup %1832  ;;  %v430_v52 = vrot.slane %v429_v42, 4  ;;  %v474_v30 = vsub.f32 %v2063_v37, %v428_v51  ;;  %v413_v63 = vrot.slane %v412_v55, 1 }
 0x1de   :  { %v531_v6 = vrot.slane %v530_v1, 1  ;;  %v516_v7 = vadd.f32 %v515_v2, %v514_v58  ;;  %v536_v8 = vrot.slane %v535_v3, 2  ;;  %v521_v10 = vadd.f32 %v520_v4, %v519_v61 }
 0x1df   :  { %v554_v18 = vsel %vm351_vm2, %v2087_v9, 0.0  ;;  %v2100_v53 = vpop.eup %1834  ;;  %v490_v58 = vmul.f32 1.442695, %v469_v47  ;;  %v431_v61 = vmax.f32 %v429_v42, %v430_v52 }
 0x1e0   :  { %v517_v12 = vrot.slane %v516_v7, 1  ;;  %v532_v16 = vadd.f32 %v531_v6, %v530_v1  ;;  %v537_v17 = vadd.f32 %v536_v8, %v535_v3  ;;  %v522_v21 = vrot.slane %v521_v10, 2  ;;  %v1722_v3 = vpop.f32.mrf.mxu1 }
 0x1e1   :  { %v555_v25 = vrot.slane %v554_v18, 4  ;;  %v540_v60 = vsel %vm351_vm2, %v2100_v53, 0.0  ;;  %v415_v1 = vsel %vm351_vm2, %v2103_v19, -inf  ;;  %v2112_v5 = vadd.f32 %v1722_v3, %v2035_v27 }
 0x1e2   :  { %v518_v22 = vadd.f32 %v517_v12, %v516_v7  ;;  %1836 = vrcp.f32 %v532_v16  ;;  %v538_v31 = vrot.slane %v537_v17, 1  ;;  %v523_v34 = vadd.f32 %v522_v21, %v521_v10  ;;  %v336_v13 = vpop.f32.mrf.mxu1 }
 0x1e3   :  { %v556_v38 = vadd.f32 %v555_v25, %v554_v18  ;;  %v541_v54 = vrot.slane %v540_v60, 4  ;;  %v500_v7 = vmul.f32 1.442695, %v474_v30  ;;  %v432_v8 = vrot.slane %v431_v61, 2 }
 0x1e4   :  { %1838 = vrcp.f32 %v518_v22  ;;  %v539_v44 = vadd.f32 %v538_v31, %v537_v17  ;;  %v524_v45 = vrot.slane %v523_v34, 1  ;;  %v414_v10 = vmax.f32 %v412_v55, %v413_v63  ;;  %v1723_v42 = vpop.f32.mrf.mxu1 }
 0x1e5   :  { %v557_v50 = vrot.slane %v556_v38, 2  ;;  %v416_v11 = vrot.slane %v415_v1, 4  ;;  %v450_v12 = vsel %vm351_vm2, %v2112_v5, -inf  ;;  %v433_v14 = vmax.f32 %v431_v61, %v432_v8 }
 0x1e6   :  { %1840 = vrcp.f32 %v539_v44  ;;  %v525_v57 = vadd.f32 %v524_v45, %v523_v34  ;;  %v2122_v16 = vadd.f32 %v2035_v27, %v336_v13  ;;  %v451_v21 = vrot.slane %v450_v12, 4 }
 0x1e7   :  { %1842 = vpow2.f32 %v494_v46  ;;  %v558_v59 = vadd.f32 %v557_v50, %v556_v38  ;;  %v417_v18 = vmax.f32 %v415_v1, %v416_v11  ;;  %v434_v24 = vrot.slane %v433_v14, 1 }
 0x1e8   :  { %1844 = vrcp.f32 %v525_v57  ;;  %v436_v25 = vsel %vm351_vm2, %v2122_v16, -inf  ;;  %v1953_v31 = vmov 2   ;;  %v452_v32 = vmax.f32 %v450_v12, %v451_v21  ;;  %v339_v57 = vpop.f32.mrf.mxu1 }
 0x1e9   :  { %1846 = vpow2.f32 %v490_v58  ;;  %v559_v6 = vrot.slane %v558_v59, 1  ;;  %v418_v29 = vrot.slane %v417_v18, 2  ;;  %v437_v38 = vrot.slane %v436_v25, 4 }
 0x1ea   :  { %1848 = vpow2.f32 %v500_v7  ;;  %v435_v41 = vmax.f32 %v433_v14, %v434_v24  ;;  %v1954_v46 = vmov 3   ;;  %v453_v47 = vrot.slane %v452_v32, 2 }
 0x1eb   :  { %v560_v17 = vadd.f32 %v559_v6, %v558_v59  ;;  %v419_v44 = vmax.f32 %v417_v18, %v418_v29  ;;  %v2145_v48 = vadd.f32 %v1723_v42, %v2035_v27  ;;  %v438_v52 = vmax.f32 %v436_v25, %v437_v38 }
 0x1ec   :  { %v475_v55 = vsub.f32 %v2094_v33, %v435_v41  ;;  %v454_v30 = vmax.f32 %v452_v32, %v453_v47  ;;  %v2158_v63 = vadd.f32 %v2035_v27, %v339_v57 }
 0x1ed   :  { %1850 = vrcp.f32 %v560_v17  ;;  %v457_v61 = vsel %vm351_vm2, %v2145_v48, -inf }
 0x1ee   :  { %v455_v8 = vrot.slane %v454_v30, 1  ;;  %v443_v11 = vsel %vm351_vm2, %v2158_v63, -inf }
 0x1ef   :  { %v1837_v62 = vpop.eup %1836  ;;  %v444_v18 = vrot.slane %v443_v11, 4 }
 0x1f0   :  { %v629_v2 = vmul.f32 %v1837_v62, %v2065_v40  ;;  %v542_v40 = vadd.f32 %v541_v54, %v540_v60  ;;  %v439_v62 = vrot.slane %v438_v52, 2  ;;  %v458_v54 = vrot.slane %v457_v61, 4 }
 0x1f1   :  { %v1839_v4 = vpop.eup %1838  ;;  %v456_v21 = vmax.f32 %v454_v30, %v455_v8 }
 0x1f2   :  { %668 = vperm.xlu1 %1733, %v629_v2   ;;  %v2115_v37 = vmul.f32 %v1839_v4, %v2069_v43  ;;  %v472_v43 = vsub.f32 %v2085_v0, %v414_v10  ;;  %v543_v22 = vrot.slane %v542_v40, 2  ;;  %v440_v27 = vmax.f32 %v438_v52, %v439_v62 }
 0x1f3   :  { %v1841_v20 = vpop.eup %1840  ;;  %v459_v13 = vmax.f32 %v457_v61, %v458_v54  ;;  %v478_v32 = vsub.f32 %v2112_v5, %v456_v21 }
 0x1f4   :  { %658 = vperm.xlu0 %1737, %v2115_v37   ;;  %v2127_v23 = vpop.eup %1842  ;;  %v496_v28 = vmul.f32 1.442695, %v472_v43  ;;  %v2133_v0 = vmul.f32 %v1841_v20, %v2075_v49  ;;  %v544_v35 = vadd.f32 %v543_v22, %v542_v40  ;;  %v441_v22 = vrot.slane %v440_v27, 1 }
 0x1f5   :  { %v1845_v34 = vpop.eup %1844  ;;  %v561_v36 = vsel %vm351_vm2, %v2127_v23, 0.0 }
 0x1f6   :  { %1734 = vset.pattern.permute.xlu1 %v1952_v15  ;;  %v2138_v39 = vpop.eup %1846  ;;  %1852 = vpow2.f32 %v496_v28  ;;  %v562_v45 = vrot.slane %v561_v36, 4  ;;  %v2142_v49 = vmul.f32 %v1845_v34, %v2080_v56  ;;  %v545_v50 = vrot.slane %v544_v35, 1 }
 0x1f7   :  { %873 = vperm.xlu1 %1734, %v629_v2   ;;  %v547_v51 = vsel %vm351_vm2, %v2138_v39, 0.0  ;;  %v2152_v58 = vpop.eup %1848  ;;  %v420_v56 = vrot.slane %v419_v44, 1  ;;  %v445_v28 = vmax.f32 %v443_v11, %v444_v18  ;;  %v442_v34 = vmax.f32 %v440_v27, %v441_v22 }
 0x1f8   :  { %1738 = vset.pattern.permute.xlu0 %v1952_v15  ;;  %v563_v59 = vadd.f32 %v562_v45, %v561_v36  ;;  %v548_v60 = vrot.slane %v547_v51, 4  ;;  %v546_v1 = vadd.f32 %v545_v50, %v544_v35  ;;  %v582_v33 = vsel %vm351_vm2, %v2152_v58, 0.0 }
 0x1f9   :  { %865 = vperm.xlu0 %1738, %v2115_v37   ;;  %v421_v4 = vmax.f32 %v419_v44, %v420_v56  ;;  %v583_v10 = vrot.slane %v582_v33, 4  ;;  %v446_v41 = vrot.slane %v445_v28, 2  ;;  %v508_v45 = vmul.f32 1.442695, %v478_v32 }
 0x1fa   :  { %v1851_v3 = vpop.eup %1850  ;;  %v564_v6 = vrot.slane %v563_v59, 2  ;;  %v549_v7 = vadd.f32 %v548_v60, %v547_v51  ;;  %1854 = vrcp.f32 %v546_v1  ;;  %v476_v47 = vsub.f32 %v2122_v16, %v442_v34 }
 0x1fb   :  { %1735 = vset.pattern.permute.xlu1 %v1953_v31  ;;  %v2169_v40 = vmul.f32 %v1851_v3, %v2087_v9  ;;  %v473_v12 = vsub.f32 %v2103_v19, %v421_v4  ;;  %v584_v20 = vadd.f32 %v583_v10, %v582_v33  ;;  %v460_v9 = vrot.slane %v459_v13, 2 }
 0x1fc   :  { %1097 = vperm.xlu1 %1735, %v629_v2   ;;  %v565_v17 = vadd.f32 %v564_v6, %v563_v59  ;;  %v550_v43 = vrot.slane %v549_v7, 2  ;;  %v504_v59 = vmul.f32 1.442695, %v476_v47 }
 0x1fd   :  { %877 = vperm.xlu0 %1738, %v2133_v0   ;;  %v498_v24 = vmul.f32 1.442695, %v473_v12  ;;  %v585_v29 = vrot.slane %v584_v20, 2  ;;  %v461_v36 = vmax.f32 %v459_v13, %v460_v9 }
 0x1fe   :  { %v566_v19 = vrot.slane %v565_v17, 1  ;;  %v551_v25 = vadd.f32 %v550_v43, %v549_v7 }
 0x1ff   :  { %v586_v44 = vadd.f32 %v585_v29, %v584_v20  ;;  %v462_v52 = vrot.slane %v461_v36, 1 }
 0x200   :  { %1736 = vset.pattern.permute.xlu1 %v1954_v46  ;;  %v552_v38 = vrot.slane %v551_v25, 1  ;;  %v567_v42 = vadd.f32 %v566_v19, %v565_v17 }
 0x201   :  { %1321 = vperm.xlu1 %1736, %v629_v2   ;;  %1744 = vset.pattern.permute.xlu0 %v1951_v26  ;;  %v502_v2 = vmul.f32 1.442695, %v475_v55  ;;  %v447_v55 = vmax.f32 %v445_v28, %v446_v41  ;;  %v587_v56 = vrot.slane %v586_v44, 1  ;;  %v463_v61 = vmax.f32 %v461_v36, %v462_v52 }
 0x202   :  { %663 = vperm.xlu0 %1744, %v2142_v49   ;;  %v553_v57 = vadd.f32 %v552_v38, %v551_v25 }
 0x203   :  { %1856 = vpow2.f32 %v502_v2  ;;  %v2174_v14 = vpop.eup %1852  ;;  %v448_v62 = vrot.slane %v447_v55, 1  ;;  %v588_v33 = vadd.f32 %v587_v56, %v586_v44 }
 0x204   :  { %1858 = vpow2.f32 %v498_v24 }
 0x205   :  { %1739 = vset.pattern.permute.xlu1 %v1953_v31  ;;  %1860 = vrcp.f32 %v567_v42 }
 0x206   :  { %1089 = vperm.xlu1 %1739, %v2115_v37   ;;  %1746 = vset.pattern.permute.xlu0 %v1953_v31  ;;  %1862 = vpow2.f32 %v508_v45 }
 0x207   :  { %1093 = vperm.xlu0 %1746, %v2142_v49   ;;  %v1855_v5 = vpop.eup %1854  ;;  %1864 = vrcp.f32 %v553_v57 }
 0x208   :  { %v633_v16 = vmul.f32 %v1855_v5, %v2100_v53  ;;  %1866 = vpow2.f32 %v504_v59  ;;  %v479_v53 = vsub.f32 %v2145_v48, %v463_v61 }
 0x209   :  { %1868 = vrcp.f32 %v588_v33 }
 0x20a   :  { %1740 = vset.pattern.permute.xlu1 %v1954_v46  ;;  %v510_v6 = vmul.f32 1.442695, %v479_v53 }
 0x20b   :  { %1313 = vperm.xlu1 %1740, %v2115_v37   ;;  %1748 = vset.pattern.permute.xlu0 %v1951_v26  ;;  %v568_v37 = vsel %vm351_vm2, %v2174_v14, 0.0 }
 0x20c   :  { %688 = vperm.xlu0 %1748, %v2169_v40   ;;  %v569_v35 = vrot.slane %v568_v37, 4  ;;  %1870 = vpow2.f32 %v510_v6 }
 0x20e   :  { %v570_v51 = vadd.f32 %v569_v35, %v568_v37 }
 0x20f   :  { %1741 = vset.pattern.permute.xlu1 %v1951_v26 }
 0x210   :  { %673 = vperm.xlu1 %1741, %v2133_v0   ;;  %1750 = vset.pattern.permute.xlu0 %v1953_v31  ;;  %v2189_v50 = vpop.eup %1856  ;;  %v571_v30 = vrot.slane %v570_v51, 2 }
 0x211   :  { %1113 = vperm.xlu0 %1750, %v2169_v40   ;;  %v589_v60 = vsel %vm351_vm2, %v2189_v50, 0.0  ;;  %v2201_v3 = vpop.eup %1858 }
 0x212   :  { %v590_v1 = vrot.slane %v589_v60, 4  ;;  %v572_v2 = vadd.f32 %v571_v30, %v570_v51  ;;  %v575_v7 = vsel %vm351_vm2, %v2201_v3, 0.0  ;;  %v1861_v48 = vpop.eup %1860 }
 0x213   :  { %v2209_v27 = vpop.eup %1862  ;;  %v576_v11 = vrot.slane %v575_v7, 4  ;;  %v2213_v17 = vmul.f32 %v1861_v48, %v2127_v23 }
 0x214   :  { %1742 = vset.pattern.permute.xlu1 %v1953_v31  ;;  %v591_v4 = vadd.f32 %v590_v1, %v589_v60  ;;  %v573_v54 = vrot.slane %v572_v2, 1  ;;  %v1865_v43 = vpop.eup %1864 }
 0x215   :  { %1101 = vperm.xlu1 %1742, %v2133_v0   ;;  %1751 = vset.pattern.permute.xlu0 %v1954_v46  ;;  %v2219_v18 = vpop.eup %1866  ;;  %v577_v20 = vadd.f32 %v576_v11, %v575_v7  ;;  %v635_v23 = vmul.f32 %v1865_v43, %v2138_v39 }
 0x216   :  { %1337 = vperm.xlu0 %1751, %v2169_v40   ;;  %v592_v10 = vrot.slane %v591_v4, 2  ;;  %v574_v12 = vadd.f32 %v573_v54, %v572_v2  ;;  %v596_v24 = vsel %vm351_vm2, %v2219_v18, 0.0  ;;  %v1869_v9 = vpop.eup %1868 }
 0x217   :  { %v597_v25 = vrot.slane %v596_v24, 4  ;;  %v2227_v37 = vmul.f32 %v1869_v9, %v2152_v58 }
 0x218   :  { %1872 = vrcp.f32 %v574_v12 }
 0x219   :  { %1743 = vset.pattern.permute.xlu1 %v1954_v46  ;;  %v2232_v29 = vpop.eup %1870  ;;  %v598_v34 = vadd.f32 %v597_v25, %v596_v24 }
 0x21a   :  { %1325 = vperm.xlu1 %1743, %v2133_v0   ;;  %1752 = vset.pattern.permute.xlu0 %v1951_v26  ;;  %v449_v0 = vmax.f32 %v447_v55, %v448_v62  ;;  %v617_v58 = vsel %vm351_vm2, %v2232_v29, 0.0 }
 0x21b   :  { %678 = vperm.xlu0 %1752, %v633_v16   ;;  %v599_v41 = vrot.slane %v598_v34, 2  ;;  %v618_v44 = vrot.slane %v617_v58, 4 }
 0x21c   :  { %v477_v8 = vsub.f32 %v2158_v63, %v449_v0  ;;  %v593_v63 = vadd.f32 %v592_v10, %v591_v4 }
 0x21d   :  { %v600_v51 = vadd.f32 %v599_v41, %v598_v34  ;;  %v619_v55 = vadd.f32 %v618_v44, %v617_v58 }
 0x21e   :  { %1745 = vset.pattern.permute.xlu1 %v1952_v15  ;;  %v506_v13 = vmul.f32 1.442695, %v477_v8  ;;  %v594_v22 = vrot.slane %v593_v63, 1 }
 0x21f   :  { %869 = vperm.xlu1 %1745, %v2142_v49   ;;  %1753 = vset.pattern.permute.xlu0 %v1953_v31  ;;  %v601_v56 = vrot.slane %v600_v51, 1 }
 0x220   :  { %1105 = vperm.xlu0 %1753, %v633_v16   ;;  %1874 = vpow2.f32 %v506_v13  ;;  %v595_v28 = vadd.f32 %v594_v22, %v593_v63  ;;  %v1888_v13 = vld [vmem:[#allocation2 + $0x10] sm:$0xff] }
 0x221   :  { %v602_v30 = vadd.f32 %v601_v56, %v600_v51 }
 0x222   :  { %1876 = vrcp.f32 %v595_v28 }
 0x223   :  { %1747 = vset.pattern.permute.xlu1 %v1954_v46 }
 0x224   :  { %1317 = vperm.xlu1 %1747, %v2142_v49   ;;  %1754 = vset.pattern.permute.xlu0 %v1954_v46  ;;  %v610_v49 = vsel %vm351_vm2, %v2209_v27, 0.0 }
 0x225   :  { %1329 = vperm.xlu0 %1754, %v633_v16   ;;  %v611_v21 = vrot.slane %v610_v49, 4  ;;  %v1873_v36 = vpop.eup %1872 }
 0x226   :  { %v641_v45 = vmul.f32 %v1873_v36, %v2174_v14 }
 0x227   :  { %v612_v19 = vadd.f32 %v611_v21, %v610_v49 }
 0x228   :  { %1749 = vset.pattern.permute.xlu1 %v1952_v15 }
 0x229   :  { %889 = vperm.xlu1 %1749, %v2169_v40   ;;  %1756 = vset.pattern.permute.xlu0 %v1952_v15  ;;  %v578_v40 = vrot.slane %v577_v20, 2  ;;  %v613_v32 = vrot.slane %v612_v19, 2 }
 0x22a   :  { %893 = vperm.xlu0 %1756, %v2213_v17  }
 0x22b   :  { %v579_v39 = vadd.f32 %v578_v40, %v577_v20  ;;  %v614_v38 = vadd.f32 %v613_v32, %v612_v19 }
 0x22d   :  { %881 = vperm.xlu1 %1749, %v633_v16   ;;  %v580_v35 = vrot.slane %v579_v39, 1  ;;  %v2240_v42 = vpop.eup %1874  ;;  %v615_v5 = vrot.slane %v614_v38, 1  ;;  %v620_v16 = vrot.slane %v619_v55, 2 }
 0x22e   :  { %885 = vperm.xlu0 %1756, %v635_v23   ;;  %v603_v52 = vsel %vm351_vm2, %v2240_v42, 0.0 }
 0x22f   :  { %v581_v47 = vadd.f32 %v580_v35, %v579_v39  ;;  %v604_v57 = vrot.slane %v603_v52, 4  ;;  %v616_v59 = vadd.f32 %v615_v5, %v614_v38  ;;  %v1877_v14 = vpop.eup %1876  ;;  %v621_v62 = vadd.f32 %v620_v16, %v619_v55 }
 0x230   :  { %v647_v61 = vmul.f32 %v1877_v14, %v2189_v50  ;;  %v2303_v14 = vld [vmem:[#allocation2 + $0x18] sm:$0xff] }
 0x231   :  { %1755 = vset.pattern.permute.xlu1 %v1951_v26  ;;  %1878 = vrcp.f32 %v581_v47  ;;  %v605_v60 = vadd.f32 %v604_v57, %v603_v52  ;;  %v622_v33 = vrot.slane %v621_v62, 1 }
 0x232   :  { %693 = vperm.xlu1 %1755, %v2213_v17   ;;  %1761 = vset.pattern.permute.xlu0 %v1951_v26  ;;  %1880 = vrcp.f32 %v616_v59 }
 0x233   :  { %708 = vperm.xlu0 %1761, %v2227_v37   ;;  %v606_v1 = vrot.slane %v605_v60, 2  ;;  %1882 = vrcp.f32 %v602_v30  ;;  %v623_v0 = vadd.f32 %v622_v33, %v621_v62 }
 0x235   :  { %v607_v2 = vadd.f32 %v606_v1, %v605_v60  ;;  %1884 = vrcp.f32 %v623_v0 }
 0x236   :  { %1757 = vset.pattern.permute.xlu1 %v1953_v31 }
 0x237   :  { %1117 = vperm.xlu1 %1757, %v2213_v17   ;;  %1764 = vset.pattern.permute.xlu0 %v1954_v46  ;;  %v608_v4 = vrot.slane %v607_v2, 1 }
 0x238   :  { %1353 = vperm.xlu0 %1764, %v2227_v37  }
 0x239   :  { %v609_v6 = vadd.f32 %v608_v4, %v607_v2 }
 0x23b   :  { %1758 = vset.pattern.permute.xlu1 %v1951_v26  ;;  %1886 = vrcp.f32 %v609_v6 }
 0x23c   :  { %683 = vperm.xlu1 %1758, %v635_v23   ;;  %1765 = vset.pattern.permute.xlu0 %v1951_v26 }
 0x23d   :  { %698 = vperm.xlu0 %1765, %v641_v45  }
 0x23e   :  { %v1879_v53 = vpop.eup %1878 }
 0x23f   :  { %v643_v50 = vmul.f32 %v1879_v53, %v2201_v3  ;;  %v1881_v54 = vpop.eup %1880 }
 0x240   :  { %1759 = vset.pattern.permute.xlu1 %v1953_v31  ;;  %v2261_v7 = vmul.f32 %v1881_v54, %v2209_v27  ;;  %v1883_v8 = vpop.eup %1882 }
 0x241   :  { %1109 = vperm.xlu1 %1759, %v635_v23   ;;  %1768 = vset.pattern.permute.xlu0 %v1954_v46  ;;  %v2266_v3 = vmul.f32 %v1883_v8, %v2219_v18  ;;  %v2289_v18 = vld [vmem:[#allocation2] sm:$0xff] }
 0x242   :  { %1345 = vperm.xlu0 %1768, %v641_v45   ;;  %v1885_v48 = vpop.eup %1884 }
 0x243   :  { %v2274_v10 = vmul.f32 %v1885_v48, %v2232_v29 }
 0x245   :  { %1760 = vset.pattern.permute.xlu1 %v1954_v46 }
 0x246   :  { %1333 = vperm.xlu1 %1760, %v635_v23   ;;  %1770 = vset.pattern.permute.xlu0 %v1952_v15 }
 0x247   :  { %909 = vperm.xlu0 %1770, %v647_v61  }
 0x248   :  { %v1887_v27 = vpop.eup %1886 }
 0x249   :  { %v2280_v11 = vmul.f32 %v1887_v27, %v2240_v42 }
 0x24a   :  { %1762 = vset.pattern.permute.xlu1 %v1952_v15 }
 0x24b   :  { %905 = vperm.xlu1 %1762, %v2227_v37   ;;  %1771 = vset.pattern.permute.xlu0 %v1953_v31 }
 0x24c   :  { %1133 = vperm.xlu0 %1771, %v647_v61  }
 0x24f   :  { %1763 = vset.pattern.permute.xlu1 %v1953_v31 }
 0x250   :  { %1129 = vperm.xlu1 %1763, %v2227_v37   ;;  %1774 = vset.pattern.permute.xlu0 %v1952_v15 }
 0x251   :  { %901 = vperm.xlu0 %1774, %v643_v50  }
 0x254   :  { %1766 = vset.pattern.permute.xlu1 %v1952_v15 }
 0x255   :  { %897 = vperm.xlu1 %1766, %v641_v45   ;;  %1777 = vset.pattern.permute.xlu0 %v1951_v26 }
 0x256   :  { %728 = vperm.xlu0 %1777, %v2261_v7  }
 0x259   :  { %1767 = vset.pattern.permute.xlu1 %v1953_v31 }
 0x25a   :  { %1121 = vperm.xlu1 %1767, %v641_v45   ;;  %718 = vperm.xlu0 %1777, %v2266_v3  }
 0x25e   :  { %1769 = vset.pattern.permute.xlu1 %v1951_v26  ;;  %1781 = vset.pattern.permute.xlu0 %v1952_v15 }
 0x25f   :  { %713 = vperm.xlu1 %1769, %v647_v61   ;;  %913 = vperm.xlu0 %1781, %v2266_v3  }
 0x263   :  { %1772 = vset.pattern.permute.xlu1 %v1954_v46  ;;  %1786 = vset.pattern.permute.xlu0 %v1953_v31 }
 0x264   :  { %1357 = vperm.xlu1 %1772, %v647_v61   ;;  %1149 = vperm.xlu0 %1786, %v2274_v10  }
 0x268   :  { %1773 = vset.pattern.permute.xlu1 %v1951_v26  ;;  %1788 = vset.pattern.permute.xlu0 %v1952_v15 }
 0x269   :  { %703 = vperm.xlu1 %1773, %v643_v50   ;;  %917 = vperm.xlu0 %1788, %v2280_v11  }
 0x26d   :  { %v669_v12 = vpop.permute.xlu1 %668  ;;  %1775 = vset.pattern.permute.xlu1 %v1953_v31  ;;  %1789 = vset.pattern.permute.xlu0 %v1953_v31 }
 0x26e   :  { %v738_v43 = vmul.f32 %v1888_v13, %v669_v12  ;;  %1125 = vperm.xlu1 %1775, %v643_v50   ;;  %1141 = vperm.xlu0 %1789, %v2280_v11  }
 0x26f   :  { %v659_v63 = vpop.permute.xlu0 %658 }
 0x270   :  { %v766_v49 = vsel %vm73_vm0, %v738_v43, 0.0  ;;  %v736_v20 = vmul.f32 %v2289_v18, %v659_v63 }
 0x271   :  { %v767_v21 = vrot.slane %v766_v49, 4 }
 0x272   :  { %v752_v23 = vsel %vm73_vm0, %v736_v20, 0.0  ;;  %v874_v22 = vpop.permute.xlu1 %873  ;;  %1776 = vset.pattern.permute.xlu1 %v1954_v46  ;;  %1791 = vset.pattern.permute.xlu0 %v1954_v46 }
 0x273   :  { %v768_v24 = vadd.f32 %v767_v21, %v766_v49  ;;  %v753_v9 = vrot.slane %v752_v23, 4  ;;  %v930_v40 = vmul.f32 %v1888_v13, %v874_v22  ;;  %1349 = vperm.xlu1 %1776, %v643_v50   ;;  %1373 = vperm.xlu0 %1791, %v2274_v10  }
 0x274   :  { %v866_v19 = vpop.permute.xlu0 %865 }
 0x275   :  { %v769_v25 = vrot.slane %v768_v24, 2  ;;  %v754_v37 = vadd.f32 %v753_v9, %v752_v23  ;;  %v958_v28 = vsel %vm73_vm0, %v930_v40, 0.0  ;;  %v928_v39 = vmul.f32 %v2289_v18, %v866_v19 }
 0x276   :  { %v959_v29 = vrot.slane %v958_v28, 4 }
 0x277   :  { %v755_v32 = vrot.slane %v754_v37, 2  ;;  %v944_v34 = vsel %vm73_vm0, %v928_v39, 0.0  ;;  %v1098_v35 = vpop.permute.xlu1 %1097  ;;  %1778 = vset.pattern.permute.xlu1 %v1952_v15  ;;  %v770_v58 = vadd.f32 %v769_v25, %v768_v24  ;;  %v2320_v39 = vld [vmem:[#allocation2 + $0x8] sm:$0xff] }
 0x278   :  { %v960_v36 = vadd.f32 %v959_v29, %v958_v28  ;;  %v945_v38 = vrot.slane %v944_v34, 4  ;;  %v1154_v41 = vmul.f32 %v1888_v13, %v1098_v35  ;;  %921 = vperm.xlu1 %1778, %v2261_v7   ;;  %v878_v42 = vpop.permute.xlu0 %877 }
 0x279   :  { %v756_v44 = vadd.f32 %v755_v32, %v754_v37  ;;  %v771_v52 = vrot.slane %v770_v58, 1  ;;  %v931_v16 = vmul.f32 %v2303_v14, %v878_v42 }
 0x27a   :  { %v961_v45 = vrot.slane %v960_v36, 2  ;;  %v946_v47 = vadd.f32 %v945_v38, %v944_v34  ;;  %v1182_v5 = vsel %vm73_vm0, %v1154_v41, 0.0 }
 0x27b   :  { %v1183_v51 = vrot.slane %v1182_v5, 4  ;;  %v757_v61 = vrot.slane %v756_v44, 1  ;;  %v772_v53 = vadd.f32 %v771_v52, %v770_v58  ;;  %v965_v6 = vsel %vm73_vm0, %v931_v16, 0.0 }
 0x27c   :  { %v962_v55 = vadd.f32 %v961_v45, %v960_v36  ;;  %v947_v57 = vrot.slane %v946_v47, 2  ;;  %v1322_v56 = vpop.permute.xlu1 %1321  ;;  %1779 = vset.pattern.permute.xlu1 %v1953_v31  ;;  %v966_v22 = vrot.slane %v965_v6, 4 }
 0x27d   :  { %v1184_v59 = vadd.f32 %v1183_v51, %v1182_v5  ;;  %v1378_v60 = vmul.f32 %v1888_v13, %v1322_v56  ;;  %1145 = vperm.xlu1 %1779, %v2261_v7   ;;  %v664_v30 = vpop.permute.xlu0 %663  ;;  %v2310_v48 = vadd.f32 %v757_v61, %v756_v44  ;;  %v2339_v61 = vld [vmem:[#allocation2 + $0x30] sm:$0xff] }
 0x27e   :  { %v963_v62 = vrot.slane %v962_v55, 1  ;;  %v948_v1 = vadd.f32 %v947_v57, %v946_v47  ;;  %v737_v29 = vmul.f32 %v2320_v39, %v664_v30  ;;  %v967_v34 = vadd.f32 %v966_v22, %v965_v6 }
 0x27f   :  { %v1185_v33 = vrot.slane %v1184_v59, 2  ;;  %v1406_v2 = vsel %vm73_vm0, %v1378_v60, 0.0 }
 0x280   :  { %v964_v0 = vadd.f32 %v963_v62, %v962_v55  ;;  %v949_v4 = vrot.slane %v948_v1, 1  ;;  %v1407_v50 = vrot.slane %v1406_v2, 4  ;;  %v759_v42 = vsel %vm73_vm0, %v737_v29, 0.0 }
 0x281   :  { %v1186_v54 = vadd.f32 %v1185_v33, %v1184_v59  ;;  %1780 = vset.pattern.permute.xlu1 %v1954_v46  ;;  %v1090_v8 = vpop.permute.xlu1 %1089  ;;  %v968_v47 = vrot.slane %v967_v34, 2  ;;  %v760_v59 = vrot.slane %v759_v42, 4 }
 0x282   :  { %v1058_v27 = vadd.f32 %v964_v0, %v772_v53  ;;  %v1074_v12 = vmax.f32 %v772_v53, %v964_v0  ;;  %v950_v13 = vadd.f32 %v949_v4, %v948_v1  ;;  %1369 = vperm.xlu1 %1780, %v2261_v7   ;;  %v1094_v43 = vpop.permute.xlu0 %1093  ;;  %v1408_v49 = vadd.f32 %v1407_v50, %v1406_v2 }
 0x283   :  { %v1187_v63 = vrot.slane %v1186_v54, 1  ;;  %v1152_v20 = vmul.f32 %v2289_v18, %v1090_v8  ;;  %v1153_v57 = vmul.f32 %v2320_v39, %v1094_v43  ;;  %v969_v1 = vadd.f32 %v968_v47, %v967_v34 }
 0x284   :  { %v1056_v21 = vadd.f32 %v950_v13, %v2310_v48  ;;  %v1072_v23 = vmax.f32 %v2310_v48, %v950_v13  ;;  %v1409_v9 = vrot.slane %v1408_v49, 2  ;;  %v761_v6 = vadd.f32 %v760_v59, %v759_v42 }
 0x285   :  { %v1188_v24 = vadd.f32 %v1187_v63, %v1186_v54  ;;  %v1168_v40 = vsel %vm73_vm0, %v1152_v20, 0.0  ;;  %v1175_v53 = vsel %vm73_vm0, %v1153_v57, 0.0  ;;  %v970_v20 = vrot.slane %v969_v1, 1 }
 0x286   :  { %v1169_v19 = vrot.slane %v1168_v40, 4  ;;  %1782 = vset.pattern.permute.xlu1 %v1953_v31  ;;  %v1314_v25 = vpop.permute.xlu1 %1313  ;;  %v1410_v28 = vadd.f32 %v1409_v9, %v1408_v49  ;;  %v1176_v63 = vrot.slane %v1175_v53, 4 }
 0x287   :  { %v1282_v37 = vadd.f32 %v1188_v24, %v1058_v27  ;;  %v2318_v7 = vmax.f32 %v1074_v12, %v1188_v24  ;;  %1137 = vperm.xlu1 %1782, %v2266_v3   ;;  %v689_v32 = vpop.permute.xlu0 %688  ;;  %v1376_v58 = vmul.f32 %v2289_v18, %v1314_v25 }
 0x288   :  { %v1170_v35 = vadd.f32 %v1169_v19, %v1168_v40  ;;  %v1411_v36 = vrot.slane %v1410_v28, 1  ;;  %v742_v62 = vmul.f32 %v2339_v61, %v689_v32  ;;  %v1177_v34 = vadd.f32 %v1176_v63, %v1175_v53 }
 0x289   :  { %v1392_v31 = vsel %vm73_vm0, %v1376_v58, 0.0  ;;  %v971_v58 = vadd.f32 %v970_v20, %v969_v1 }
 0x28a   :  { %v1171_v38 = vrot.slane %v1170_v35, 2  ;;  %v2326_v41 = vadd.f32 %v1411_v36, %v1410_v28  ;;  %v1393_v44 = vrot.slane %v1392_v31, 4  ;;  %v794_v12 = vsel %vm73_vm0, %v742_v62, 0.0 }
 0x28b   :  { %1783 = vset.pattern.permute.xlu1 %v1954_v46  ;;  %v674_v45 = vpop.permute.xlu1 %673  ;;  %v1178_v59 = vrot.slane %v1177_v34, 2 }
 0x28c   :  { %v1172_v5 = vadd.f32 %v1171_v38, %v1170_v35  ;;  %v739_v51 = vmul.f32 %v2303_v14, %v674_v45  ;;  %1361 = vperm.xlu1 %1783, %v2266_v3   ;;  %v1114_v52 = vpop.permute.xlu0 %1113  ;;  %v2333_v18 = vadd.f32 %v2326_v41, %v1282_v37  ;;  %v1522_v55 = vmax.f32 %v2318_v7, %v2326_v41 }
 0x28d   :  { %v1394_v56 = vadd.f32 %v1393_v44, %v1392_v31  ;;  %v1158_v9 = vmul.f32 %v2339_v61, %v1114_v52  ;;  %v2365_v52 = vld [vmem:[#allocation2 + $0x20] sm:$0xff] }
 0x28e   :  { %v1173_v16 = vrot.slane %v1172_v5, 1  ;;  %v773_v60 = vsel %vm73_vm0, %v739_v51, 0.0 }
 0x28f   :  { %v1395_v30 = vrot.slane %v1394_v56, 2  ;;  %v774_v3 = vrot.slane %v773_v60, 4  ;;  %v1210_v38 = vsel %vm73_vm0, %v1158_v9, 0.0 }
 0x290   :  { %v1174_v33 = vadd.f32 %v1173_v16, %v1172_v5  ;;  %1784 = vset.pattern.permute.xlu1 %v1951_v26  ;;  %v1102_v2 = vpop.permute.xlu1 %1101  ;;  %v1211_v16 = vrot.slane %v1210_v38, 4 }
 0x291   :  { %v1396_v0 = vadd.f32 %v1395_v30, %v1394_v56  ;;  %v775_v4 = vadd.f32 %v774_v3, %v773_v60  ;;  %v1155_v50 = vmul.f32 %v2303_v14, %v1102_v2  ;;  %733 = vperm.xlu1 %1784, %v2274_v10   ;;  %v1338_v54 = vpop.permute.xlu0 %1337 }
 0x292   :  { %v1280_v8 = vadd.f32 %v1174_v33, %v1056_v21  ;;  %v2346_v48 = vmax.f32 %v1072_v23, %v1174_v33  ;;  %v762_v21 = vrot.slane %v761_v6, 2  ;;  %v795_v23 = vrot.slane %v794_v12, 4 }
 0x293   :  { %v1397_v27 = vrot.slane %v1396_v0, 1  ;;  %v776_v13 = vrot.slane %v775_v4, 2  ;;  %v1189_v43 = vsel %vm73_vm0, %v1155_v50, 0.0  ;;  %v1382_v44 = vmul.f32 %v2339_v61, %v1338_v54 }
 0x294   :  { %v1190_v49 = vrot.slane %v1189_v43, 4  ;;  %v796_v42 = vadd.f32 %v795_v23, %v794_v12 }
 0x295   :  { %v2350_v22 = vadd.f32 %v1397_v27, %v1396_v0  ;;  %v777_v24 = vadd.f32 %v776_v13, %v775_v4  ;;  %1785 = vset.pattern.permute.xlu1 %v1952_v15  ;;  %v1326_v40 = vpop.permute.xlu1 %1325  ;;  %v1434_v53 = vsel %vm73_vm0, %v1382_v44, 0.0  ;;  %v2395_v44 = vld [vmem:[#allocation2 + $0x38] sm:$0xff] }
 0x296   :  { %v1191_v19 = vadd.f32 %v1190_v49, %v1189_v43  ;;  %v1379_v25 = vmul.f32 %v2303_v14, %v1326_v40  ;;  %925 = vperm.xlu1 %1785, %v2274_v10   ;;  %v679_v37 = vpop.permute.xlu0 %678  ;;  %v763_v14 = vadd.f32 %v762_v21, %v761_v6  ;;  %v797_v1 = vrot.slane %v796_v42, 2 }
 0x297   :  { %v2357_v28 = vadd.f32 %v2350_v22, %v1280_v8  ;;  %v1520_v29 = vmax.f32 %v2346_v48, %v2350_v22  ;;  %v778_v32 = vrot.slane %v777_v24, 1  ;;  %v740_v57 = vmul.f32 %v2365_v52, %v679_v37 }
 0x298   :  { %v1192_v35 = vrot.slane %v1191_v19, 2  ;;  %v1413_v15 = vsel %vm73_vm0, %v1379_v25, 0.0  ;;  %v1179_v6 = vadd.f32 %v1178_v59, %v1177_v34  ;;  %v1212_v8 = vadd.f32 %v1211_v16, %v1210_v38 }
 0x299   :  { %v779_v36 = vadd.f32 %v778_v32, %v777_v24  ;;  %v1414_v31 = vrot.slane %v1413_v15, 4  ;;  %v780_v4 = vsel %vm73_vm0, %v740_v57, 0.0  ;;  %v1435_v24 = vrot.slane %v1434_v53, 4 }
 0x29a   :  { %v1193_v10 = vadd.f32 %v1192_v35, %v1191_v19  ;;  %1787 = vset.pattern.permute.xlu1 %v1951_v26  ;;  %v870_v45 = vpop.permute.xlu1 %869  ;;  %v764_v26 = vrot.slane %v763_v14, 1  ;;  %v781_v9 = vrot.slane %v780_v4, 4  ;;  %v798_v40 = vadd.f32 %v797_v1, %v796_v42 }
 0x29b   :  { %v1059_v47 = vadd.f32 %v971_v58, %v779_v36  ;;  %v1075_v5 = vmax.f32 %v779_v36, %v971_v58  ;;  %v1415_v51 = vadd.f32 %v1414_v31, %v1413_v15  ;;  %723 = vperm.xlu1 %1787, %v2280_v11   ;;  %v1106_v56 = vpop.permute.xlu0 %1105  ;;  %v929_v30 = vmul.f32 %v2320_v39, %v870_v45 }
 0x29c   :  { %v1194_v60 = vrot.slane %v1193_v10, 1  ;;  %v1156_v3 = vmul.f32 %v2365_v52, %v1106_v56  ;;  %v765_v19 = vadd.f32 %v764_v26, %v763_v14  ;;  %v1180_v25 = vrot.slane %v1179_v6, 1 }
 0x29d   :  { %v1416_v62 = vrot.slane %v1415_v51, 2  ;;  %v951_v2 = vsel %vm73_vm0, %v929_v30, 0.0  ;;  %v1213_v34 = vrot.slane %v1212_v8, 2  ;;  %v1436_v36 = vadd.f32 %v1435_v24, %v1434_v53 }
 0x29e   :  { %v1195_v33 = vadd.f32 %v1194_v60, %v1193_v10  ;;  %v952_v50 = vrot.slane %v951_v2, 4  ;;  %v1196_v49 = vsel %vm73_vm0, %v1156_v3, 0.0  ;;  %v782_v38 = vadd.f32 %v781_v9, %v780_v4 }
 0x29f   :  { %v1417_v0 = vadd.f32 %v1416_v62, %v1415_v51  ;;  %1790 = vset.pattern.permute.xlu1 %v1954_v46  ;;  %v1318_v54 = vpop.permute.xlu1 %1317  ;;  %v1197_v37 = vrot.slane %v1196_v49, 4  ;;  %v2393_v42 = vmul.f32 0.25, %v2333_v18  ;;  %v799_v10 = vrot.slane %v798_v40, 1 }
 0x2a0   :  { %v1283_v27 = vadd.f32 %v1195_v33, %v1059_v47  ;;  %v2375_v12 = vmax.f32 %v1075_v5, %v1195_v33  ;;  %1365 = vperm.xlu1 %1790, %v2280_v11   ;;  %v2378_v13 = vpop.permute.xlu0 %1329  ;;  %v953_v63 = vadd.f32 %v952_v50, %v951_v2  ;;  %v1377_v20 = vmul.f32 %v2320_v39, %v1318_v54 }
 0x2a1   :  { %v1418_v43 = vrot.slane %v1417_v0, 1  ;;  %v1181_v47 = vadd.f32 %v1180_v25, %v1179_v6  ;;  %v1198_v5 = vadd.f32 %v1197_v37, %v1196_v49  ;;  %v1214_v59 = vadd.f32 %v1213_v34, %v1212_v8 }
 0x2a2   :  { %v954_v21 = vrot.slane %v953_v63, 2  ;;  %v1399_v23 = vsel %vm73_vm0, %v1377_v20, 0.0  ;;  %v1437_v30 = vrot.slane %v1436_v36, 2  ;;  %v783_v62 = vrot.slane %v782_v38, 2 }
 0x2a3   :  { %v2382_v46 = vadd.f32 %v1418_v43, %v1417_v0  ;;  %v1400_v11 = vrot.slane %v1399_v23, 4  ;;  %v2401_v1 = vadd.f32 %v799_v10, %v798_v40  ;;  %v1199_v0 = vrot.slane %v1198_v5, 2 }
 0x2a4   :  { %1341 = vperm.xlu1 %1790, %v2213_v17   ;;  %v890_v32 = vpop.permute.xlu1 %889  ;;  %v955_v15 = vadd.f32 %v954_v21, %v953_v63  ;;  %v1215_v49 = vrot.slane %v1214_v59, 1  ;;  %v1438_v20 = vadd.f32 %v1437_v30, %v1436_v36  ;;  %v784_v24 = vadd.f32 %v783_v62, %v782_v38 }
 0x2a5   :  { %v2387_v35 = vadd.f32 %v2382_v46, %v1283_v27  ;;  %v1523_v39 = vmax.f32 %v2375_v12, %v2382_v46  ;;  %v894_v58 = vpop.permute.xlu0 %893  ;;  %v1401_v31 = vadd.f32 %v1400_v11, %v1399_v23  ;;  %v934_v14 = vmul.f32 %v2339_v61, %v890_v32 }
 0x2a6   :  { %v956_v17 = vrot.slane %v955_v15, 1  ;;  %v935_v45 = vmul.f32 %v2395_v44, %v894_v58  ;;  %v1200_v11 = vadd.f32 %v1199_v0, %v1198_v5  ;;  %v1536_v58 = vmul.f32 0.25, %v2357_v28 }
 0x2a7   :  { %v1402_v51 = vrot.slane %v1401_v31, 2  ;;  %v986_v57 = vsel %vm73_vm0, %v934_v14, 0.0  ;;  %v1439_v14 = vrot.slane %v1438_v20, 1  ;;  %v785_v10 = vrot.slane %v784_v24, 1 }
 0x2a8   :  { %v882_v56 = vpop.permute.xlu1 %881  ;;  %v957_v16 = vadd.f32 %v956_v17, %v955_v15  ;;  %v987_v60 = vrot.slane %v986_v57, 4  ;;  %v993_v61 = vsel %vm73_vm0, %v935_v45, 0.0 }
 0x2a9   :  { %v886_v18 = vpop.permute.xlu0 %885  ;;  %v1403_v3 = vadd.f32 %v1402_v51, %v1401_v31  ;;  %v932_v26 = vmul.f32 %v2365_v52, %v882_v56  ;;  %v994_v50 = vrot.slane %v993_v61, 4 }
 0x2aa   :  { %v1057_v33 = vadd.f32 %v957_v16, %v765_v19  ;;  %v1073_v2 = vmax.f32 %v765_v19, %v957_v16  ;;  %v988_v53 = vadd.f32 %v987_v60, %v986_v57  ;;  %v2406_v19 = vld [vmem:[#allocation2 + $0x28] sm:$0xff]  ;;  %v2423_v16 = vadd.f32 %v1215_v49, %v1214_v59 }
 0x2ab   :  { %v1404_v4 = vrot.slane %v1403_v3, 1  ;;  %v972_v54 = vsel %vm73_vm0, %v932_v26, 0.0  ;;  %v933_v25 = vmul.f32 %v2406_v19, %v886_v18  ;;  %v995_v15 = vadd.f32 %v994_v50, %v993_v61 }
 0x2ac   :  { %v1281_v6 = vadd.f32 %v1181_v47, %v1057_v33  ;;  %v1297_v8 = vmax.f32 %v1073_v2, %v1181_v47  ;;  %v989_v27 = vrot.slane %v988_v53, 2  ;;  %v973_v43 = vrot.slane %v972_v54, 4 }
 0x2ad   :  { %v694_v63 = vpop.permute.xlu1 %693  ;;  %v1405_v9 = vadd.f32 %v1404_v4, %v1403_v3  ;;  %v979_v57 = vsel %vm73_vm0, %v933_v25, 0.0  ;;  %v1201_v60 = vrot.slane %v1200_v11, 1  ;;  %v996_v18 = vrot.slane %v995_v15, 2 }
 0x2ae   :  { %v2404_v40 = vpop.permute.xlu0 %708  ;;  %v990_v21 = vadd.f32 %v989_v27, %v988_v53  ;;  %v974_v23 = vadd.f32 %v973_v43, %v972_v54  ;;  %v743_v37 = vmul.f32 %v2395_v44, %v694_v63  ;;  %v980_v62 = vrot.slane %v979_v57, 4 }
 0x2af   :  { %v1505_v32 = vadd.f32 %v1405_v9, %v1281_v6  ;;  %v1521_v34 = vmax.f32 %v1297_v8, %v1405_v9  ;;  %v2435_v26 = vadd.f32 %v1439_v14, %v1438_v20  ;;  %v786_v33 = vadd.f32 %v785_v10, %v784_v24 }
 0x2b0   :  { %v991_v31 = vrot.slane %v990_v21, 1  ;;  %v975_v36 = vrot.slane %v974_v23, 2  ;;  %v801_v38 = vsel %vm73_vm0, %v743_v37, 0.0  ;;  %v997_v4 = vadd.f32 %v996_v18, %v995_v15 }
 0x2b1   :  { %v1537_v17 = vmul.f32 0.25, %v1505_v32  ;;  %v2416_v45 = vsel %vm1568_vm3, %v1521_v34, %v1520_v29  ;;  %v802_v28 = vrot.slane %v801_v38, 4  ;;  %v981_v49 = vadd.f32 %v980_v62, %v979_v57 }
 0x2b2   :  { %v1118_v47 = vpop.permute.xlu1 %1117  ;;  %v2418_v5 = vadd.f32 %v991_v31, %v990_v21  ;;  %v976_v51 = vadd.f32 %v975_v36, %v974_v23  ;;  %v998_v37 = vrot.slane %v997_v4, 1 }
 0x2b3   :  { %v2421_v56 = vpop.permute.xlu0 %1353  ;;  %v1569_v61 = vsel %vm1568_vm3, %v1537_v17, %v1536_v58  ;;  %v803_v3 = vadd.f32 %v802_v28, %v801_v38  ;;  %v1159_v59 = vmul.f32 %v2395_v44, %v1118_v47  ;;  %v982_v34 = vrot.slane %v981_v49, 2 }
 0x2b4   :  { %v2428_v48 = vsel %vm1570_vm4, %v2393_v42, %v1569_v61  ;;  %v1062_v22 = vadd.f32 %v2418_v5, %v2401_v1  ;;  %v1078_v29 = vmax.f32 %v2401_v1, %v2418_v5  ;;  %v977_v30 = vrot.slane %v976_v51, 1 }
 0x2b5   :  { %v1202_v42 = vadd.f32 %v1201_v60, %v1200_v11  ;;  %v804_v50 = vrot.slane %v803_v3, 2  ;;  %v1217_v54 = vsel %vm73_vm0, %v1159_v59, 0.0  ;;  %v999_v10 = vadd.f32 %v998_v37, %v997_v4 }
 0x2b6   :  { %v1286_v2 = vadd.f32 %v2423_v16, %v1062_v22  ;;  %v978_v53 = vadd.f32 %v977_v30, %v976_v51  ;;  %v1218_v43 = vrot.slane %v1217_v54, 4  ;;  %v983_v57 = vadd.f32 %v982_v34, %v981_v49 }
 0x2b7   :  { %v684_v0 = vpop.permute.xlu1 %683  ;;  %v805_v20 = vadd.f32 %v804_v50, %v803_v3  ;;  %v1380_v3 = vmul.f32 %v2365_v52, %v2378_v13 }
 0x2b8   :  { %v2440_v6 = vadd.f32 %v2435_v26, %v1286_v2  ;;  %v1060_v8 = vadd.f32 %v978_v53, %v786_v33  ;;  %v1076_v27 = vmax.f32 %v786_v33, %v978_v53  ;;  %v2442_v63 = vpop.permute.xlu0 %698  ;;  %v1219_v21 = vadd.f32 %v1218_v43, %v1217_v54 }
 0x2b9   :  { %v806_v23 = vrot.slane %v805_v20, 1  ;;  %v741_v32 = vmul.f32 %v2406_v19, %v684_v0  ;;  %v984_v53 = vrot.slane %v983_v57, 1 }
 0x2ba   :  { %v2444_v24 = vadd.f32 %v1202_v42, %v1060_v8  ;;  %v2446_v9 = vmax.f32 %v1076_v27, %v1202_v42  ;;  %v1220_v11 = vrot.slane %v1219_v21, 2 }
 0x2bb   :  { %v807_v58 = vadd.f32 %v806_v23, %v805_v20  ;;  %v787_v36 = vsel %vm73_vm0, %v741_v32, 0.0  ;;  %v985_v43 = vadd.f32 %v984_v53, %v983_v57  ;;  %v2466_v57 = vmax.f32 %v1078_v29, %v2423_v16  ;;  %v2482_v53 = vld [vmem:[#allocation2 + $0x58] sm:$0xff] }
 0x2bc   :  { %v1110_v25 = vpop.permute.xlu1 %1109  ;;  %v1221_v31 = vadd.f32 %v1220_v11, %v1219_v21  ;;  %v788_v14 = vrot.slane %v787_v36, 4 }
 0x2bd   :  { %v1157_v15 = vmul.f32 %v2406_v19, %v1110_v25  ;;  %v1346_v38 = vpop.permute.xlu0 %1345  ;;  %v1063_v18 = vadd.f32 %v999_v10, %v807_v58  ;;  %v1079_v34 = vmax.f32 %v807_v58, %v999_v10 }
 0x2be   :  { %v1222_v17 = vrot.slane %v1221_v31, 1  ;;  %v789_v28 = vadd.f32 %v788_v14, %v787_v36 }
 0x2bf   :  { %v1203_v47 = vsel %vm73_vm0, %v1157_v15, 0.0  ;;  %v1896_v15 = vld [vmem:[#allocation2 + $0x50] sm:$0xff] }
 0x2c0   :  { %v1204_v60 = vrot.slane %v1203_v47, 4  ;;  %v1223_v22 = vadd.f32 %v1222_v17, %v1221_v31  ;;  %v790_v30 = vrot.slane %v789_v28, 2  ;;  %v746_v31 = vmul.f32 %v1896_v15, %v2404_v40 }
 0x2c1   :  { %v1334_v51 = vpop.permute.xlu1 %1333  ;;  %v1386_v40 = vmul.f32 %v1896_v15, %v2421_v56 }
 0x2c2   :  { %v1381_v61 = vmul.f32 %v2406_v19, %v1334_v51  ;;  %v1205_v62 = vadd.f32 %v1204_v60, %v1203_v47  ;;  %v2455_v59 = vadd.f32 %v1223_v22, %v1063_v18  ;;  %v910_v2 = vpop.permute.xlu0 %909  ;;  %v791_v0 = vadd.f32 %v790_v30, %v789_v28 }
 0x2c3   :  { %v1420_v19 = vsel %vm73_vm0, %v1380_v3, 0.0  ;;  %v2468_v28 = vmax.f32 %v1079_v34, %v1223_v22  ;;  %v822_v10 = vsel %vm73_vm0, %v746_v31, 0.0  ;;  %v1462_v3 = vsel %vm73_vm0, %v1386_v40, 0.0 }
 0x2c4   :  { %v1427_v33 = vsel %vm73_vm0, %v1381_v61, 0.0  ;;  %v1206_v42 = vrot.slane %v1205_v62, 2  ;;  %v792_v54 = vrot.slane %v791_v0, 1  ;;  %v1421_v23 = vrot.slane %v1420_v19, 4  ;;  %v1897_v61 = vld [vmem:[#allocation2 + $0x40] sm:$0xff] }
 0x2c5   :  { %v1428_v50 = vrot.slane %v1427_v33, 4  ;;  %v744_v18 = vmul.f32 %v1897_v61, %v2442_v63  ;;  %v823_v29 = vrot.slane %v822_v10, 4  ;;  %v1384_v22 = vmul.f32 %v1897_v61, %v1346_v38 }
 0x2c6   :  { %v906_v4 = vpop.permute.xlu1 %905  ;;  %v1207_v8 = vadd.f32 %v1206_v42, %v1205_v62  ;;  %v793_v49 = vadd.f32 %v792_v54, %v791_v0  ;;  %v1422_v47 = vadd.f32 %v1421_v23, %v1420_v19  ;;  %v939_v56 = vmul.f32 %v2482_v53, %v910_v2 }
 0x2c7   :  { %v1429_v27 = vadd.f32 %v1428_v50, %v1427_v33  ;;  %v1134_v52 = vpop.permute.xlu0 %1133  ;;  %v938_v5 = vmul.f32 %v1896_v15, %v906_v4  ;;  %v808_v33 = vsel %vm73_vm0, %v744_v18, 0.0  ;;  %v824_v54 = vadd.f32 %v823_v29, %v822_v10 }
 0x2c8   :  { %v1208_v20 = vrot.slane %v1207_v8, 1  ;;  %v1061_v25 = vadd.f32 %v985_v43, %v793_v49  ;;  %v1077_v37 = vmax.f32 %v793_v49, %v985_v43  ;;  %v1423_v16 = vrot.slane %v1422_v47, 2 }
 0x2c9   :  { %v1430_v21 = vrot.slane %v1429_v27, 2  ;;  %v1014_v63 = vsel %vm73_vm0, %v938_v5, 0.0  ;;  %v809_v4 = vrot.slane %v808_v33, 4  ;;  %v1448_v19 = vsel %vm73_vm0, %v1384_v22, 0.0 }
 0x2ca   :  { %v1209_v11 = vadd.f32 %v1208_v20, %v1207_v8  ;;  %v1424_v42 = vadd.f32 %v1423_v16, %v1422_v47  ;;  %v1463_v8 = vrot.slane %v1462_v3, 4  ;;  %v1021_v38 = vsel %vm73_vm0, %v939_v56, 0.0 }
 0x2cb   :  { %v1130_v13 = vpop.permute.xlu1 %1129  ;;  %v1431_v32 = vadd.f32 %v1430_v21, %v1429_v27  ;;  %v1015_v27 = vrot.slane %v1014_v63, 4  ;;  %v1526_v20 = vmax.f32 %v2466_v57, %v2435_v26  ;;  %v1163_v2 = vmul.f32 %v2482_v53, %v1134_v52 }
 0x2cc   :  { %v1285_v36 = vadd.f32 %v1209_v11, %v1061_v25  ;;  %v2460_v14 = vmax.f32 %v1077_v37, %v1209_v11  ;;  %v902_v58 = vpop.permute.xlu0 %901  ;;  %v1162_v50 = vmul.f32 %v1896_v15, %v1130_v13  ;;  %v1425_v21 = vrot.slane %v1424_v42, 1 }
 0x2cd   :  { %v1432_v17 = vrot.slane %v1431_v32, 1  ;;  %v1449_v23 = vrot.slane %v1448_v19, 4  ;;  %v825_v13 = vrot.slane %v824_v54, 2  ;;  %v1022_v37 = vrot.slane %v1021_v38, 4 }
 0x2ce   :  { %v1238_v25 = vsel %vm73_vm0, %v1162_v50, 0.0  ;;  %v1464_v34 = vadd.f32 %v1463_v8, %v1462_v3  ;;  %v810_v15 = vadd.f32 %v809_v4, %v808_v33  ;;  %v1016_v31 = vadd.f32 %v1015_v27, %v1014_v63  ;;  %v2506_v50 = vld [vmem:[#allocation2 + $0x70] sm:$0xff] }
 0x2cf   :  { %v2470_v60 = vadd.f32 %v1432_v17, %v1431_v32  ;;  %v1245_v17 = vsel %vm73_vm0, %v1163_v2, 0.0  ;;  %v1239_v47 = vrot.slane %v1238_v25, 4  ;;  %v2500_v40 = vmul.f32 0.25, %v2387_v35 }
 0x2d0   :  { %v898_v51 = vpop.permute.xlu1 %897  ;;  %v2502_v18 = vadd.f32 %v1425_v21, %v1424_v42  ;;  %v826_v5 = vadd.f32 %v825_v13, %v824_v54  ;;  %v1023_v16 = vadd.f32 %v1022_v37, %v1021_v38  ;;  %v811_v3 = vrot.slane %v810_v15, 2 }
 0x2d1   :  { %v2476_v30 = vadd.f32 %v2470_v60, %v1285_v36  ;;  %v1525_v1 = vmax.f32 %v2460_v14, %v2470_v60  ;;  %v729_v0 = vpop.permute.xlu0 %728  ;;  %v936_v43 = vmul.f32 %v1897_v61, %v898_v51  ;;  %v2494_v51 = vld [vmem:[#allocation2 + $0x48] sm:$0xff]  ;;  %v1017_v33 = vrot.slane %v1016_v31, 2 }
 0x2d2   :  { %v937_v52 = vmul.f32 %v2494_v51, %v902_v58  ;;  %v1246_v56 = vrot.slane %v1245_v17, 4  ;;  %v1240_v63 = vadd.f32 %v1239_v47, %v1238_v25  ;;  %v750_v35 = vmul.f32 %v2506_v50, %v729_v0 }
 0x2d3   :  { %v1000_v36 = vsel %vm73_vm0, %v936_v43, 0.0  ;;  %v1610_v54 = vsel %vm1570_vm4, %v1522_v55, %v2416_v45  ;;  %v2515_v8 = vmul.f32 0.25, %v2440_v6  ;;  %v827_v0 = vrot.slane %v826_v5, 1  ;;  %v2526_v6 = vld [vmem:[#allocation2 + $0x60] sm:$0xff] }
 0x2d4   :  { %v1001_v29 = vrot.slane %v1000_v36, 4  ;;  %v1007_v58 = vsel %vm73_vm0, %v937_v52, 0.0  ;;  %v2523_v27 = vsel %vm1572_vm5, %v1523_v39, %v1610_v54  ;;  %v1024_v43 = vrot.slane %v1023_v16, 2 }
 0x2d5   :  { %v1122_v62 = vpop.permute.xlu1 %1121  ;;  %v719_v32 = vpop.permute.xlu0 %718  ;;  %v1247_v55 = vadd.f32 %v1246_v56, %v1245_v17  ;;  %v1008_v45 = vrot.slane %v1007_v58, 4  ;;  %v1018_v25 = vadd.f32 %v1017_v33, %v1016_v31  ;;  %v1241_v13 = vrot.slane %v1240_v63, 2 }
 0x2d6   :  { %v1160_v11 = vmul.f32 %v1897_v61, %v1122_v62  ;;  %v1450_v61 = vadd.f32 %v1449_v23, %v1448_v19  ;;  %v1465_v62 = vrot.slane %v1464_v34, 2  ;;  %v1002_v2 = vadd.f32 %v1001_v29, %v1000_v36 }
 0x2d7   :  { %v812_v23 = vadd.f32 %v811_v3, %v810_v15  ;;  %v850_v12 = vsel %vm73_vm0, %v750_v35, 0.0  ;;  %v1508_v46 = vadd.f32 %v2502_v18, %v2444_v24  ;;  %v1248_v52 = vrot.slane %v1247_v55, 2 }
 0x2d8   :  { %v1224_v22 = vsel %vm73_vm0, %v1160_v11, 0.0  ;;  %v1451_v4 = vrot.slane %v1450_v61, 2  ;;  %v1466_v41 = vadd.f32 %v1465_v62, %v1464_v34  ;;  %v748_v11 = vmul.f32 %v2526_v6, %v719_v32 }
 0x2d9   :  { %v1225_v19 = vrot.slane %v1224_v22, 4  ;;  %v1025_v34 = vadd.f32 %v1024_v43, %v1023_v16  ;;  %v1003_v36 = vrot.slane %v1002_v2, 2  ;;  %v1009_v15 = vadd.f32 %v1008_v45, %v1007_v58 }
 0x2da   :  { %v714_v49 = vpop.permute.xlu1 %713  ;;  %v914_v42 = vpop.permute.xlu0 %913  ;;  %v1452_v39 = vadd.f32 %v1451_v4, %v1450_v61  ;;  %v851_v31 = vrot.slane %v850_v12, 4  ;;  %v1467_v62 = vrot.slane %v1466_v41, 1  ;;  %v813_v3 = vrot.slane %v812_v23, 1 }
 0x2db   :  { %v747_v7 = vmul.f32 %v2482_v53, %v714_v49  ;;  %v940_v21 = vmul.f32 %v2526_v6, %v914_v42  ;;  %v1226_v37 = vadd.f32 %v1225_v19, %v1224_v22  ;;  %v2533_v49 = vadd.f32 %v827_v0, %v826_v5 }
 0x2dc   :  { %v1019_v33 = vrot.slane %v1018_v25, 1  ;;  %v1242_v24 = vadd.f32 %v1241_v13, %v1240_v63  ;;  %v1453_v61 = vrot.slane %v1452_v39, 1  ;;  %v836_v32 = vsel %vm73_vm0, %v748_v11, 0.0 }
 0x2dd   :  { %v829_v17 = vsel %vm73_vm0, %v747_v7, 0.0  ;;  %v1028_v29 = vsel %vm73_vm0, %v940_v21, 0.0  ;;  %v1227_v22 = vrot.slane %v1226_v37, 2  ;;  %v2538_v16 = vmul.f32 0.25, %v1508_v46 }
 0x2de   :  { %v830_v5 = vrot.slane %v829_v17, 4  ;;  %v1026_v56 = vrot.slane %v1025_v34, 1  ;;  %v1004_v35 = vadd.f32 %v1003_v36, %v1002_v2  ;;  %v1029_v42 = vrot.slane %v1028_v29, 4 }
 0x2df   :  { %v2497_v10 = vpop.permute.xlu1 %1357  ;;  %v1249_v54 = vadd.f32 %v1248_v52, %v1247_v55  ;;  %v1010_v58 = vrot.slane %v1009_v15, 2  ;;  %v852_v4 = vadd.f32 %v851_v31, %v850_v12  ;;  %v2542_v43 = vadd.f32 %v1467_v62, %v1466_v41 }
 0x2e0   :  { %v1387_v19 = vmul.f32 %v2482_v53, %v2497_v10  ;;  %v1020_v63 = vadd.f32 %v1019_v33, %v1018_v25  ;;  %v1243_v7 = vrot.slane %v1242_v24, 1  ;;  %v837_v45 = vrot.slane %v836_v32, 4  ;;  %v1150_v10 = vpop.permute.xlu0 %1149 }
 0x2e1   :  { %v2544_v21 = vadd.f32 %v813_v3, %v812_v23  ;;  %v2546_v13 = vadd.f32 %v1453_v61, %v1452_v39  ;;  %v1228_v46 = vadd.f32 %v1227_v22, %v1226_v37  ;;  %v831_v2 = vadd.f32 %v830_v5, %v829_v17  ;;  %v2562_v61 = vld [vmem:[#allocation2 + $0x78] sm:$0xff] }
 0x2e2   :  { %v2549_v55 = vmul.f32 0.25, %v2476_v30  ;;  %v2551_v12 = vadd.f32 %v1026_v56, %v1025_v34  ;;  %v1005_v11 = vrot.slane %v1004_v35, 1  ;;  %v1030_v53 = vadd.f32 %v1029_v42, %v1028_v29 }
 0x2e3   :  { %v1250_v41 = vrot.slane %v1249_v54, 1  ;;  %v1011_v36 = vadd.f32 %v1010_v58, %v1009_v15  ;;  %v853_v25 = vrot.slane %v852_v4, 2  ;;  %v1469_v52 = vsel %vm73_vm0, %v1387_v19, 0.0 }
 0x2e4   :  { %v2517_v38 = vpop.permute.xlu1 %703  ;;  %v1066_v23 = vadd.f32 %v1020_v63, %v2533_v49  ;;  %v1244_v39 = vadd.f32 %v1243_v7, %v1242_v24  ;;  %v838_v31 = vadd.f32 %v837_v45, %v836_v32  ;;  %v1524_v30 = vmax.f32 %v2446_v9, %v2502_v18  ;;  %v918_v56 = vpop.permute.xlu0 %917 }
 0x2e5   :  { %v1082_v34 = vmax.f32 %v2533_v49, %v1020_v63  ;;  %v1229_v17 = vrot.slane %v1228_v46, 1  ;;  %v832_v29 = vrot.slane %v831_v2, 2  ;;  %v745_v15 = vmul.f32 %v2494_v51, %v2517_v38 }
 0x2e6   :  { %v1006_v62 = vadd.f32 %v1005_v11, %v1004_v35  ;;  %v1031_v3 = vrot.slane %v1030_v53, 2  ;;  %v1470_v33 = vrot.slane %v1469_v52, 4  ;;  %v1167_v24 = vmul.f32 %v2562_v61, %v1150_v10 }
 0x2e7   :  { %v2565_v22 = vadd.f32 %v1250_v41, %v1249_v54  ;;  %v1012_v32 = vrot.slane %v1011_v36, 1  ;;  %v854_v5 = vadd.f32 %v853_v25, %v852_v4  ;;  %v1290_v18 = vadd.f32 %v1244_v39, %v1066_v23  ;;  %v2591_v23 = vld [vmem:[#allocation2 + $0x68] sm:$0xff] }
 0x2e8   :  { %v839_v49 = vrot.slane %v838_v31, 2  ;;  %v1612_v42 = vsel %vm1574_vm6, %v1524_v30, %v2523_v27  ;;  %v1573_v38 = vsel %vm1572_vm5, %v2500_v40, %v2428_v48  ;;  %v2573_v35 = vmax.f32 %v1082_v34, %v1244_v39 }
 0x2e9   :  { %v1126_v47 = vpop.permute.xlu1 %1125  ;;  %v1230_v58 = vadd.f32 %v1229_v17, %v1228_v46  ;;  %v833_v19 = vadd.f32 %v832_v29, %v831_v2  ;;  %v815_v54 = vsel %vm73_vm0, %v745_v15, 0.0  ;;  %v1032_v4 = vadd.f32 %v1031_v3, %v1030_v53 }
 0x2ea   :  { %v1161_v9 = vmul.f32 %v2494_v51, %v1126_v47  ;;  %v1064_v47 = vadd.f32 %v1006_v62, %v2544_v21  ;;  %v1471_v7 = vadd.f32 %v1470_v33, %v1469_v52  ;;  %v1273_v45 = vsel %vm73_vm0, %v1167_v24, 0.0 }
 0x2eb   :  { %v1613_v48 = vsel %vm1576_vm7, %v1525_v1, %v1612_v42  ;;  %v1575_v40 = vsel %vm1574_vm6, %v2538_v16, %v1573_v38  ;;  %v2588_v46 = vadd.f32 %v1012_v32, %v1011_v36  ;;  %v855_v2 = vrot.slane %v854_v5, 1 }
 0x2ec   :  { %v1231_v27 = vsel %vm73_vm0, %v1161_v9, 0.0  ;;  %v840_v10 = vadd.f32 %v839_v49, %v838_v31  ;;  %v816_v53 = vrot.slane %v815_v54, 4  ;;  %v1514_v41 = vadd.f32 %v2542_v43, %v1290_v18 }
 0x2ed   :  { %v1288_v25 = vadd.f32 %v1230_v58, %v1064_v47  ;;  %v834_v52 = vrot.slane %v833_v19, 1  ;;  %v1080_v14 = vmax.f32 %v2544_v21, %v1006_v62  ;;  %v1274_v60 = vrot.slane %v1273_v45, 4 }
 0x2ee   :  { %v1350_v0 = vpop.permute.xlu1 %1349  ;;  %v1232_v1 = vrot.slane %v1231_v27, 4  ;;  %v2599_v16 = vsel %vm1578_vm8, %v1526_v20, %v1613_v48  ;;  %v1033_v36 = vrot.slane %v1032_v4, 1  ;;  %v1472_v31 = vrot.slane %v1471_v7, 2 }
 0x2ef   :  { %v1385_v11 = vmul.f32 %v2494_v51, %v1350_v0  ;;  %v941_v51 = vmul.f32 %v2591_v23, %v918_v56  ;;  %v1142_v0 = vpop.permute.xlu0 %1141  ;;  %v1577_v34 = vsel %vm1576_vm7, %v2549_v55, %v1575_v40  ;;  %v1530_v21 = vmax.f32 %v2573_v35, %v2542_v43 }
 0x2f0   :  { %v2606_v17 = vmax.f32 %v1080_v14, %v1230_v58  ;;  %v841_v29 = vrot.slane %v840_v10, 1  ;;  %v817_v15 = vadd.f32 %v816_v53, %v815_v54  ;;  %v1512_v62 = vadd.f32 %v2546_v13, %v1288_v25 }
 0x2f1   :  { %v1455_v30 = vsel %vm73_vm0, %v1385_v11, 0.0  ;;  %v835_v26 = vadd.f32 %v834_v52, %v833_v19  ;;  %v1035_v57 = vsel %vm73_vm0, %v941_v51, 0.0  ;;  %v2612_v20 = vsel %vm1578_vm8, %v2515_v8, %v1577_v34 }
 0x2f2   :  { %v2614_v3 = vadd.f32 %v855_v2, %v854_v5  ;;  %v1233_v33 = vadd.f32 %v1232_v1, %v1231_v27  ;;  %v1165_v55 = vmul.f32 %v2591_v23, %v1142_v0  ;;  %v1456_v24 = vrot.slane %v1455_v30, 4 }
 0x2f3   :  { %v2555_v37 = vpop.permute.xlu1 %921  ;;  %v2617_v32 = vmul.f32 0.25, %v1514_v41  ;;  %v2619_v9 = vadd.f32 %v1033_v36, %v1032_v4  ;;  %v1473_v18 = vadd.f32 %v1472_v31, %v1471_v7  ;;  %v1275_v49 = vadd.f32 %v1274_v60, %v1273_v45  ;;  %v1374_v8 = vpop.permute.xlu0 %1373 }
 0x2f4   :  { %v1528_v42 = vmax.f32 %v2606_v17, %v2546_v13  ;;  %v818_v38 = vrot.slane %v817_v15, 2  ;;  %v1036_v58 = vrot.slane %v1035_v57, 4  ;;  %v942_v5 = vmul.f32 %v2506_v50, %v2555_v37 }
 0x2f5   :  { %v2625_v19 = vmul.f32 0.25, %v1512_v62  ;;  %v2627_v54 = vadd.f32 %v841_v29, %v840_v10  ;;  %v1067_v47 = vadd.f32 %v2551_v12, %v835_v26  ;;  %v1083_v4 = vmax.f32 %v835_v26, %v2551_v12 }
 0x2f6   :  { %v1234_v7 = vrot.slane %v1233_v33, 2  ;;  %v1259_v45 = vsel %vm73_vm0, %v1165_v55, 0.0  ;;  %v1457_v27 = vadd.f32 %v1456_v24, %v1455_v30  ;;  %v1474_v40 = vrot.slane %v1473_v18, 1 }
 0x2f7   :  { %v2635_v48 = vadd.f32 %v2619_v9, %v2627_v54  ;;  %v1276_v37 = vrot.slane %v1275_v49, 2  ;;  %v1391_v2 = vmul.f32 %v2562_v61, %v1374_v8  ;;  %v1084_v10 = vmax.f32 %v2627_v54, %v2619_v9 }
 0x2f8   :  { %v2576_v63 = vpop.permute.xlu1 %1145  ;;  %v819_v53 = vadd.f32 %v818_v38, %v817_v15  ;;  %v1037_v41 = vadd.f32 %v1036_v58, %v1035_v57  ;;  %v1042_v12 = vsel %vm73_vm0, %v942_v5, 0.0  ;;  %v1260_v52 = vrot.slane %v1259_v45, 4 }
 0x2f9   :  { %v1166_v51 = vmul.f32 %v2506_v50, %v2576_v63  ;;  %v1291_v1 = vadd.f32 %v2565_v22, %v1067_v47  ;;  %v1235_v0 = vadd.f32 %v1234_v7, %v1233_v33  ;;  %v1458_v36 = vrot.slane %v1457_v27, 2 }
 0x2fa   :  { %v2648_v30 = vmax.f32 %v1083_v4, %v2565_v22  ;;  %v2650_v34 = vadd.f32 %v1474_v40, %v1473_v18  ;;  %v1497_v29 = vsel %vm73_vm0, %v1391_v2, 0.0  ;;  %v1043_v15 = vrot.slane %v1042_v12, 4 }
 0x2fb   :  { %v1277_v62 = vadd.f32 %v1276_v37, %v1275_v49  ;;  %v820_v63 = vrot.slane %v819_v53, 1  ;;  %v1038_v26 = vrot.slane %v1037_v41, 2  ;;  %v1236_v24 = vrot.slane %v1235_v0, 1 }
 0x2fc   :  { %v1459_v22 = vadd.f32 %v1458_v36, %v1457_v27  ;;  %v1515_v38 = vadd.f32 %v2650_v34, %v1291_v1  ;;  %v1044_v58 = vadd.f32 %v1043_v15, %v1042_v12  ;;  %v2733_v35 = vmax.f32 %v2648_v30, %v2650_v34 }
 0x2fd   :  { %v1370_v39 = vpop.permute.xlu1 %1369  ;;  %v821_v5 = vadd.f32 %v820_v63, %v819_v53  ;;  %v1237_v27 = vadd.f32 %v1236_v24, %v1235_v0 }
 0x2fe   :  { %v1390_v14 = vmul.f32 %v2506_v50, %v1370_v39  ;;  %v1266_v39 = vsel %vm73_vm0, %v1166_v51, 0.0  ;;  %v2662_v36 = vmul.f32 0.25, %v1515_v38 }
 0x2ff   :  { %v1267_v47 = vrot.slane %v1266_v39, 4  ;;  %v1065_v53 = vadd.f32 %v2588_v46, %v821_v5 }
 0x300   :  { %v1490_v57 = vsel %vm73_vm0, %v1390_v14, 0.0  ;;  %v1045_v14 = vrot.slane %v1044_v58, 2 }
 0x301   :  { %v1491_v4 = vrot.slane %v1490_v57, 4  ;;  %v1268_v15 = vadd.f32 %v1267_v47, %v1266_v39 }
 0x302   :  { %v1138_v56 = vpop.permute.xlu1 %1137 }
 0x303   :  { %v1164_v11 = vmul.f32 %v2526_v6, %v1138_v56  ;;  %v1498_v56 = vrot.slane %v1497_v29, 4  ;;  %v1492_v63 = vadd.f32 %v1491_v4, %v1490_v57  ;;  %v1081_v57 = vmax.f32 %v821_v5, %v2588_v46 }
 0x305   :  { %v1252_v31 = vsel %vm73_vm0, %v1164_v11, 0.0  ;;  %v1039_v11 = vadd.f32 %v1038_v26, %v1037_v41 }
 0x306   :  { %v1253_v33 = vrot.slane %v1252_v31, 4 }
 0x307   :  { %v1362_v25 = vpop.permute.xlu1 %1361 }
 0x308   :  { %v1388_v60 = vmul.f32 %v2526_v6, %v1362_v25  ;;  %v1261_v6 = vadd.f32 %v1260_v52, %v1259_v45  ;;  %v1278_v45 = vrot.slane %v1277_v62, 1  ;;  %v1254_v40 = vadd.f32 %v1253_v33, %v1252_v31 }
 0x309   :  { %v1460_v25 = vrot.slane %v1459_v22, 1  ;;  %v1499_v52 = vadd.f32 %v1498_v56, %v1497_v29 }
 0x30a   :  { %v1476_v50 = vsel %vm73_vm0, %v1388_v60, 0.0  ;;  %v1262_v2 = vrot.slane %v1261_v6, 2  ;;  %v1255_v41 = vrot.slane %v1254_v40, 2  ;;  %v2666_v26 = vadd.f32 %v1278_v45, %v1277_v62 }
 0x30b   :  { %v1477_v8 = vrot.slane %v1476_v50, 4  ;;  %v1461_v29 = vadd.f32 %v1460_v25, %v1459_v22  ;;  %v1500_v33 = vrot.slane %v1499_v52, 2 }
 0x30c   :  { %v734_v55 = vpop.permute.xlu1 %733  ;;  %v1263_v56 = vadd.f32 %v1262_v2, %v1261_v6  ;;  %v1256_v4 = vadd.f32 %v1255_v41, %v1254_v40 }
 0x30d   :  { %v751_v18 = vmul.f32 %v2562_v61, %v734_v55  ;;  %v1478_v60 = vadd.f32 %v1477_v8, %v1476_v50  ;;  %v1040_v55 = vrot.slane %v1039_v11, 1  ;;  %v1289_v50 = vadd.f32 %v1237_v27, %v1065_v53 }
 0x30e   :  { %v1269_v8 = vrot.slane %v1268_v15, 2  ;;  %v1501_v22 = vadd.f32 %v1500_v33, %v1499_v52  ;;  %v1264_v6 = vrot.slane %v1263_v56, 1  ;;  %v1257_v49 = vrot.slane %v1256_v4, 1 }
 0x30f   :  { %v857_v7 = vsel %vm73_vm0, %v751_v18, 0.0  ;;  %v1046_v18 = vadd.f32 %v1045_v14, %v1044_v58  ;;  %v2670_v47 = vadd.f32 %v1040_v55, %v1039_v11  ;;  %v1513_v45 = vadd.f32 %v1461_v29, %v1289_v50 }
 0x310   :  { %v858_v37 = vrot.slane %v857_v7, 4  ;;  %v1270_v53 = vadd.f32 %v1269_v8, %v1268_v15  ;;  %v1502_v52 = vrot.slane %v1501_v22, 1  ;;  %v1258_v8 = vadd.f32 %v1257_v49, %v1256_v4 }
 0x311   :  { %v926_v51 = vpop.permute.xlu1 %925  ;;  %v1047_v58 = vrot.slane %v1046_v18, 1 }
 0x312   :  { %v859_v1 = vadd.f32 %v858_v37, %v857_v7  ;;  %v943_v12 = vmul.f32 %v2562_v61, %v926_v51  ;;  %v1479_v61 = vrot.slane %v1478_v60, 2  ;;  %v1493_v7 = vrot.slane %v1492_v63, 2 }
 0x313   :  { %v1048_v41 = vadd.f32 %v1047_v58, %v1046_v18  ;;  %v1271_v50 = vrot.slane %v1270_v53, 1  ;;  %v1503_v18 = vadd.f32 %v1502_v52, %v1501_v22  ;;  %v1292_v13 = vadd.f32 %v1258_v8, %v2635_v48 }
 0x314   :  { %v860_v31 = vrot.slane %v859_v1, 2  ;;  %v1049_v0 = vsel %vm73_vm0, %v943_v12, 0.0  ;;  %v1480_v2 = vadd.f32 %v1479_v61, %v1478_v60  ;;  %v1305_v12 = vmax.f32 %v1081_v57, %v1237_v27 }
 0x315   :  { %v1050_v24 = vrot.slane %v1049_v0, 4  ;;  %v1070_v4 = vadd.f32 %v1048_v41, %v2614_v3 }
 0x316   :  { %v724_v38 = vpop.permute.xlu1 %723  ;;  %v861_v62 = vadd.f32 %v860_v31, %v859_v1  ;;  %v1529_v40 = vmax.f32 %v1305_v12, %v1461_v29  ;;  %v1545_v1 = vmul.f32 0.25, %v1513_v45  ;;  %v1481_v31 = vrot.slane %v1480_v2, 1 }
 0x317   :  { %v1051_v37 = vadd.f32 %v1050_v24, %v1049_v0  ;;  %v749_v39 = vmul.f32 %v2591_v23, %v724_v38  ;;  %v1494_v0 = vadd.f32 %v1493_v7, %v1492_v63 }
 0x318   :  { %v862_v46 = vrot.slane %v861_v62, 1  ;;  %v1616_v29 = vsel %vm1568_vm3, %v1529_v40, %v1528_v42  ;;  %v1482_v45 = vadd.f32 %v1481_v31, %v1480_v2  ;;  %v1582_v49 = vsel %vm1568_vm3, %v1545_v1, %v2625_v19 }
 0x319   :  { %v1052_v25 = vrot.slane %v1051_v37, 2  ;;  %v843_v51 = vsel %vm73_vm0, %v749_v39, 0.0  ;;  %v1495_v27 = vrot.slane %v1494_v0, 1  ;;  %v1308_v42 = vmax.f32 %v1084_v10, %v1258_v8 }
 0x31a   :  { %v844_v14 = vrot.slane %v843_v51, 4  ;;  %v863_v7 = vadd.f32 %v862_v46, %v861_v62  ;;  %v1516_v12 = vadd.f32 %v1482_v45, %v1292_v13  ;;  %v1617_v9 = vsel %vm1570_vm4, %v1530_v21, %v1616_v29 }
 0x31b   :  { %v1053_v24 = vadd.f32 %v1052_v25, %v1051_v37  ;;  %v1366_v38 = vpop.permute.xlu1 %1365  ;;  %v1532_v48 = vmax.f32 %v1308_v42, %v1482_v45  ;;  %v1618_v21 = vsel %vm1572_vm5, %v2733_v35, %v1617_v9 }
 0x31c   :  { %v845_v5 = vadd.f32 %v844_v14, %v843_v51  ;;  %v1389_v11 = vmul.f32 %v2591_v23, %v1366_v38  ;;  %v1265_v23 = vadd.f32 %v1264_v6, %v1263_v56  ;;  %v1272_v56 = vadd.f32 %v1271_v50, %v1270_v53 }
 0x31d   :  { %v1054_v55 = vrot.slane %v1053_v24, 1  ;;  %v1496_v6 = vadd.f32 %v1495_v27, %v1494_v0  ;;  %v1086_v53 = vmax.f32 %v2614_v3, %v1048_v41 }
 0x31e   :  { %v846_v33 = vrot.slane %v845_v5, 2  ;;  %v1483_v60 = vsel %vm73_vm0, %v1389_v11, 0.0  ;;  %v1294_v54 = vadd.f32 %v1272_v56, %v1070_v4  ;;  %v1583_v11 = vsel %vm1570_vm4, %v2617_v32, %v1582_v49 }
 0x31f   :  { %v1055_v15 = vadd.f32 %v1054_v55, %v1053_v24  ;;  %v1484_v63 = vrot.slane %v1483_v60, 4  ;;  %v1342_v61 = vpop.permute.xlu1 %1341  ;;  %v1310_v52 = vmax.f32 %v1086_v53, %v1272_v56  ;;  %v1548_v55 = vmul.f32 0.25, %v1516_v12 }
 0x320   :  { %v847_v37 = vadd.f32 %v846_v33, %v845_v5  ;;  %v1383_v39 = vmul.f32 %v2395_v44, %v1342_v61  ;;  %v1518_v3 = vadd.f32 %v1496_v6, %v1294_v54  ;;  %v1619_v32 = vsel %vm1574_vm6, %v1532_v48, %v1618_v21 }
 0x321   :  { %v1485_v57 = vadd.f32 %v1484_v63, %v1483_v60  ;;  %v1071_v25 = vadd.f32 %v1055_v15, %v863_v7  ;;  %v1087_v22 = vmax.f32 %v863_v7, %v1055_v15  ;;  %v1534_v60 = vmax.f32 %v1310_v52, %v1496_v6 }
 0x322   :  { %v848_v51 = vrot.slane %v847_v37, 1  ;;  %v1441_v58 = vsel %vm73_vm0, %v1383_v39, 0.0  ;;  %v1584_v50 = vsel %vm1572_vm5, %v2662_v36, %v1583_v11  ;;  %v1550_v61 = vmul.f32 0.25, %v1518_v3 }
 0x323   :  { %v1486_v62 = vrot.slane %v1485_v57, 2  ;;  %v1442_v44 = vrot.slane %v1441_v58, 4  ;;  %v1295_v24 = vadd.f32 %v2666_v26, %v1071_v25  ;;  %v1585_v30 = vsel %vm1574_vm6, %v1548_v55, %v1584_v50 }
 0x324   :  { %v849_v17 = vadd.f32 %v848_v51, %v847_v37 }
 0x325   :  { %v1487_v2 = vadd.f32 %v1486_v62, %v1485_v57  ;;  %v1443_v14 = vadd.f32 %v1442_v44, %v1441_v58  ;;  %v1519_v41 = vadd.f32 %v1503_v18, %v1295_v24 }
 0x326   :  { %v1069_v19 = vadd.f32 %v2670_v47, %v849_v17  ;;  %v1085_v38 = vmax.f32 %v849_v17, %v2670_v47  ;;  %v1311_v47 = vmax.f32 %v1087_v22, %v2666_v26 }
 0x327   :  { %v1488_v0 = vrot.slane %v1487_v2, 1  ;;  %v1444_v46 = vrot.slane %v1443_v14, 2  ;;  %v1551_v8 = vmul.f32 0.25, %v1519_v41 }
 0x328   :  { %v1293_v10 = vadd.f32 %v1265_v23, %v1069_v19  ;;  %v1309_v5 = vmax.f32 %v1085_v38, %v1265_v23  ;;  %v1535_v15 = vmax.f32 %v1311_v47, %v1503_v18 }
 0x329   :  { %v1489_v40 = vadd.f32 %v1488_v0, %v1487_v2  ;;  %v1445_v1 = vadd.f32 %v1444_v46, %v1443_v14 }
 0x32b   :  { %v1517_v31 = vadd.f32 %v1489_v40, %v1293_v10  ;;  %v1533_v33 = vmax.f32 %v1309_v5, %v1489_v40  ;;  %v1446_v43 = vrot.slane %v1445_v1, 1 }
 0x32d   :  { %v1549_v26 = vmul.f32 0.25, %v1517_v31  ;;  %v1447_v27 = vadd.f32 %v1446_v43, %v1445_v1  ;;  %v1620_v63 = vsel %vm1576_vm7, %v1533_v33, %v1619_v32 }
 0x32e   :  { %v1621_v7 = vsel %vm1578_vm8, %v1534_v60, %v1620_v63 }
 0x32f   :  { %v1511_v34 = vadd.f32 %v1447_v27, %v2455_v59  ;;  %v1622_v37 = vsel %vm1580_vm9, %v1535_v15, %v1621_v7  ;;  %v1527_v39 = vmax.f32 %v2468_v28, %v1447_v27  ;;  %v1586_v23 = vsel %vm1576_vm7, %v1549_v26, %v1585_v30 }
 0x330   :  { %1625 = vrot.lane.b32.xlu0 %v1622_v37, %s1955_s4  ;;  %v1587_v36 = vsel %vm1578_vm8, %v1550_v61, %v1586_v23 }
 0x331   :  { %v1543_v29 = vmul.f32 0.25, %v1511_v34  ;;  %v1615_v18 = vsel %vm1580_vm9, %v1527_v39, %v2599_v16  ;;  %v1588_v57 = vsel %vm1580_vm9, %v1551_v8, %v1587_v36 }
 0x332   :  { %1623 = vrot.lane.b32.xlu1 %v1615_v18, %s1955_s4  ;;  %1592 = vst.msk [vmem:[#allocation5 + $0x8] sm:$0xff] %vm73_vm0, %v1588_v57 }
 0x333   :  { %v1581_v59 = vsel %vm1580_vm9, %v1543_v29, %v2612_v20 }
 0x334   :  { %1591 = vst.msk [vmem:[#allocation5] sm:$0xff] %vm73_vm0, %v1581_v59 }
 0x3a2   :  { %v1626_v28 = vpop.permute.xlu0 %1625 }
 0x3a3   :  { %1631 = vst.msk [vmem:[#allocation5 + $0x8] sm:$0xff] %vm1629_vm10, %v1626_v28 }
 0x3a4   :  { %v1624_v45 = vpop.permute.xlu1 %1623 }
 0x3a5   :  { %1630 = vst.msk [vmem:[#allocation5] sm:$0xff] %vm1629_vm10, %v1624_v45 }
 0x3a6   :  { %1935 = shalt.err (!%p1932_p9)
}
 0x3a7   :  { %1643 = dma.vmem_to_hbm [thread:$0]  %s1638_s13, 256, %s2732_s5, [#allocation4], %s1949_s21, %s1949_s21, %s1950_s22  }
 0x3a8   :  { %1946 = dma.done.wait [#allocation4], 256  }
 0x3a9   :  { %1947 = vsyncadd [#allocation4], 4294967040 }
 0x3aa   :  { %1647 = vsyncpa [#allocation3], 1 }
 0x3ab   :  { %1648 = vsyncpa [#allocation4], 1 }

</bundles_post_ra>
